<compile_context>
chip_gen: v5e
topology: v5e:2x2
jax: 0.10.0
libtpu: 0.0.40
codegen_flags: <defaults>
</compile_context>

<pallas_src>
import functools
import math

import jax
import jax.numpy as jnp
from jax.experimental import pallas as pl
from jax.experimental.pallas import tpu as pltpu

_EPS = 1e-5                      # nn.BatchNorm2d default eps
_LANE = 128                      # TPU lane width
_VMEM_LIMIT = 32 * 1024 * 1024   # safe on v5e / v6e / v7x (<= ~48 MiB for v7x)


# ----------------------------- small helpers --------------------------------

def _cdiv(a, b):
    return -(-a // b)


def _round_up(x, m):
    return _cdiv(x, m) * m


def _pad2d(x, rows, cols):
    r, c = rows - x.shape[0], cols - x.shape[1]
    if r == 0 and c == 0:
        return x
    return jnp.pad(x, ((0, r), (0, c)))


def _pick_tm(m, cap):
    """Row tile: sublane(16)-aligned, capped, and yielding >=2 tiles whenever
    m > 16 so the 'parallel' M axis load-balances across v7x's two TensorCores."""
    tm = _round_up(max(_cdiv(m, 2), 8), 16)
    return max(16, min(cap, tm))


# ----------------------------- Pallas kernels --------------------------------

def _channel_stats_kernel(x_ref, ps_ref, pq_ref):
    """Per-channel partial sum / sum-of-squares for one M tile (pad rows are zero)."""
    x = x_ref[...].astype(jnp.float32)                        # (tm, Cp)
    ps_ref[0] = jnp.sum(x, axis=0, keepdims=True)
    pq_ref[0] = jnp.sum(x * x, axis=0, keepdims=True)


def _bn_relu_conv1x1_kernel(x_ref, s_ref, t_ref, w_ref, y_ref, ps_ref, pq_ref,
                            *, m_real, tm):
    """Fused BN1(apply)+ReLU -> 1x1-conv GEMM -> BN2 partial stats.

    Single-shot K (no K tiling): tm*Cp + Cp*Np operands are VMEM-resident.
    Pad M rows are masked to zero so y1 and the BN2 stats stay clean.
    """
    i = pl.program_id(0)
    x = x_ref[...].astype(jnp.float32)                        # (tm, Cp)
    a = jnp.maximum(x * s_ref[...] + t_ref[...], 0.0)
    row = i * tm + jax.lax.broadcasted_iota(jnp.int32, a.shape, 0)
    a = jnp.where(row < m_real, a, 0.0)                       # mask ragged-M pad rows
    y = jnp.dot(a.astype(jnp.bfloat16), w_ref[...],
                preferred_element_type=jnp.float32)           # (tm, Np) f32
    y_ref[...] = y.astype(y_ref.dtype)
    ps_ref[0] = jnp.sum(y, axis=0, keepdims=True)             # BN2 partial stats,
    pq_ref[0] = jnp.sum(y * y, axis=0, keepdims=True)         # folded outside


def _conv_matmul_kernel(a_ref, w_ref, o_ref, *, apply_relu):
    """(optionally ReLU'd) A @ W — the im2col 3x3-conv GEMM.  Single-shot K."""
    a = a_ref[...]
    if apply_relu:                                            # BN2's ReLU fused here
        a = jnp.maximum(a, 0)
    o_ref[...] = jnp.dot(a.astype(jnp.bfloat16), w_ref[...],
                         preferred_element_type=jnp.float32).astype(o_ref.dtype)


# ----------------------------- Pallas wrappers --------------------------------

def channel_stats(x2, cp):
    """x2: (M, C) bf16 -> per-channel (sum, sum_sq), each (cp,) f32."""
    M, C = x2.shape
    tm = _pick_tm(M, 1024)                      # mem-bound: bigger row tiles
    Mp = _round_up(M, tm)
    nt = Mp // tm
    xp = _pad2d(x2, Mp, cp)                     # zero pad -> contributes 0 to stats
    ps, pq = pl.pallas_call(
        _channel_stats_kernel,
        out_shape=(jax.ShapeDtypeStruct((nt, 1, cp), jnp.float32),
                   jax.ShapeDtypeStruct((nt, 1, cp), jnp.float32)),
        grid=(nt,),
        in_specs=[pl.BlockSpec((tm, cp), lambda i: (i, 0))],
        out_specs=(pl.BlockSpec((1, 1, cp), lambda i: (i, 0, 0)),
                   pl.BlockSpec((1, 1, cp), lambda i: (i, 0, 0))),
        compiler_params=pltpu.CompilerParams(
            dimension_semantics=("parallel",),
            vmem_limit_bytes=_VMEM_LIMIT),
    )(xp)
    return jnp.sum(ps, axis=(0, 1)), jnp.sum(pq, axis=(0, 1))


def _fold_bn(psum, psq, gamma_p, beta_p, m_real):
    """Fold batch stats into per-channel (scale, shift), each (1, Cp) f32."""
    mean = psum / float(m_real)
    var = jnp.maximum(psq / float(m_real) - mean * mean, 0.0)   # biased (train-mode)
    scale = gamma_p * jax.lax.rsqrt(var + _EPS)
    shift = beta_p - mean * scale
    return scale.reshape(1, -1), shift.reshape(1, -1)


def bn_relu_conv1x1(x2, s1, t1, w1p):
    """relu(bn1(x)) @ W1 with BN2 partial stats emitted from the same pass.

    x2: (M, C) bf16;  s1/t1: (1, Cp) f32;  w1p: (Cp, Np) bf16.
    Returns y1 (Mp, Np) bf16 (pad rows zero) and BN2 (sum, sum_sq), each (Np,) f32.
    """
    M, C = x2.shape
    Cp, Np = w1p.shape
    tm = _pick_tm(M, 256)
    Mp = _round_up(M, tm)
    nt = Mp // tm
    xp = _pad2d(x2, Mp, Cp)
    kern = functools.partial(_bn_relu_conv1x1_kernel, m_real=M, tm=tm)
    y1, ps, pq = pl.pallas_call(
        kern,
        out_shape=(jax.ShapeDtypeStruct((Mp, Np), jnp.bfloat16),
                   jax.ShapeDtypeStruct((nt, 1, Np), jnp.float32),
                   jax.ShapeDtypeStruct((nt, 1, Np), jnp.float32)),
        grid=(nt,),
        in_specs=[pl.BlockSpec((tm, Cp), lambda i: (i, 0)),
                  pl.BlockSpec((1, Cp), lambda i: (0, 0)),
                  pl.BlockSpec((1, Cp), lambda i: (0, 0)),
                  pl.BlockSpec((Cp, Np), lambda i: (0, 0))],   # weights stay resident
        out_specs=(pl.BlockSpec((tm, Np), lambda i: (i, 0)),
                   pl.BlockSpec((1, 1, Np), lambda i: (i, 0, 0)),
                   pl.BlockSpec((1, 1, Np), lambda i: (i, 0, 0))),
        compiler_params=pltpu.CompilerParams(
            dimension_semantics=("parallel",),
            vmem_limit_bytes=_VMEM_LIMIT),
        cost_estimate=pl.CostEstimate(
            flops=2 * Mp * Np * Cp, transcendentals=0,
            bytes_accessed=Mp * Cp * 2 + Cp * Np * 2 + Mp * Np * 2),
    )(xp, s1, t1, w1p)
    return y1, jnp.sum(ps, axis=(0, 1)), jnp.sum(pq, axis=(0, 1))


def conv_matmul(a, wp, apply_relu):
    """(M, K) @ (Kp, Np) im2col-conv GEMM; single-shot K, lane-dense output."""
    M, K = a.shape
    Kp, Np = wp.shape
    assert Kp % _LANE == 0 and Np % _LANE == 0 and K <= Kp
    tm = _pick_tm(M, 256)
    Mp = _round_up(M, tm)
    # No K tiling: A tile + resident weights must comfortably fit VMEM.
    assert (tm * Kp + Kp * Np) * 2 + tm * Np * 4 < 8 * 1024 * 1024
    ap = _pad2d(a, Mp, Kp)
    kern = functools.partial(_conv_matmul_kernel, apply_relu=apply_relu)
    out = pl.pallas_call(
        kern,
        out_shape=jax.ShapeDtypeStruct((Mp, Np), jnp.float32),
        grid=(Mp // tm,),
        in_specs=[pl.BlockSpec((tm, Kp), lambda i: (i, 0)),
                  pl.BlockSpec((Kp, Np), lambda i: (0, 0))],   # weights stay resident
        out_specs=pl.BlockSpec((tm, Np), lambda i: (i, 0)),
        compiler_params=pltpu.CompilerParams(
            dimension_semantics=("parallel",),
            vmem_limit_bytes=_VMEM_LIMIT),
        cost_estimate=pl.CostEstimate(
            flops=2 * Mp * Np * Kp, transcendentals=0,
            bytes_accessed=Mp * Kp * 2 + Kp * Np * 2 + Mp * Np * 4),
    )(ap, wp)
    return out[:M]


# ----------------------------- conv glue --------------------------------------

def _im2col_3x3(x_nhwc):
    """3x3 / stride 1 / pad 1 patch extraction on UNPADDED channels (XLA glue).

    Returns (N*H*W, 9*C); column index = tap*C + c with tap = dh*3 + dw, matching
    the w3_p layout built in make_convnormal.
    """
    N, H, W, C = x_nhwc.shape
    xp = jnp.pad(x_nhwc, ((0, 0), (1, 1), (1, 1), (0, 0)))
    patches = [xp[:, dh:dh + H, dw:dw + W, :] for dh in range(3) for dw in range(3)]
    p = jnp.stack(patches, axis=3)                 # (N, H, W, 9, C)
    return p.reshape(N * H * W, 9 * C)


# ----------------------------- parameters --------------------------------------

def _conv_w(key, cout, cin, k):
    fan_in = cin * k * k
    bound = 1.0 / math.sqrt(fan_in)                # PyTorch Conv2d default init
    return jax.random.uniform(key, (cout, cin, k, k), jnp.float32, -bound, bound)


def make_convnormal(key, nIn, nOut, bottleneck, bnWidth):
    """Parameters for ConvNormal (= ConvBN(nIn, nOut, 'normal', bottleneck, bnWidth))."""
    k1, k2 = jax.random.split(key)
    nInner = nIn
    p = dict(bottleneck=bool(bottleneck), nIn=nIn, nOut=nOut)
    if bottleneck:
        nInner = min(nInner, bnWidth * nOut)
        p['gamma1'] = jnp.ones((nIn,), jnp.float32)
        p['beta1'] = jnp.zeros((nIn,), jnp.float32)
        p['w1'] = _conv_w(k1, nInner, nIn, 1)
        p['gamma2'] = jnp.ones((nInner,), jnp.float32)
        p['beta2'] = jnp.zeros((nInner,), jnp.float32)
    p['nInner'] = nInner
    p['w3'] = _conv_w(k2, nOut, nInner, 3)

    # ---- kernel-ready, lane-padded versions ----
    cin_p = _round_up(nIn, _LANE)
    inner_p = _round_up(nInner, _LANE)
    nout_p = _round_up(nOut, _LANE)
    k3_p = _round_up(9 * nInner, _LANE)            # pad K AFTER tap-flattening (9*nInner)
    p.update(cin_p=cin_p, inner_p=inner_p, nout_p=nout_p, k3_p=k3_p)
    if bottleneck:
        # gamma padded with 0 (not 1) so padded channels stay exactly zero downstream.
        p['gamma1_p'] = jnp.pad(p['gamma1'], (0, cin_p - nIn))
        p['beta1_p'] = jnp.pad(p['beta1'], (0, cin_p - nIn))
        w1 = p['w1'].reshape(nInner, nIn).T                        # (nIn, nInner)
        p['w1_p'] = _pad2d(w1, cin_p, inner_p).astype(jnp.bfloat16)
        p['gamma2_p'] = jnp.pad(p['gamma2'], (0, inner_p - nInner))
        p['beta2_p'] = jnp.pad(p['beta2'], (0, inner_p - nInner))
    # (dh, dw, cin, cout) flatten -> row = (dh*3+dw)*nInner + c, matching _im2col_3x3.
    w3 = jnp.transpose(p['w3'], (2, 3, 1, 0)).reshape(9 * nInner, nOut)
    p['w3_p'] = _pad2d(w3, k3_p, nout_p).astype(jnp.bfloat16)
    return p


# ----------------------------- forward ------------------------------------------

def _convbn_normal_fwd(p, x_nhwc):
    """ConvBN(type='normal') on NHWC input; returns (N, H, W, nOut) f32."""
    N, H, W, Cin = x_nhwc.shape
    M = N * H * W
    nInner = p['nInner']
    if p['bottleneck']:
        x2 = x_nhwc.reshape(M, Cin).astype(jnp.bfloat16)
        # pass 1 over x: BN1 batch statistics
        ps1, pq1 = channel_stats(x2, p['cin_p'])
        s1, t1 = _fold_bn(ps1, pq1, p['gamma1_p'], p['beta1_p'], M)
        # pass 2 over x: fused BN1 + ReLU + 1x1 conv, emitting BN2 partial stats
        y1, ps2, pq2 = bn_relu_conv1x1(x2, s1, t1, p['w1_p'])
        s2, t2 = _fold_bn(ps2, pq2, p['gamma2_p'], p['beta2_p'], M)
        # BN2 affine in the im2col glue: the conv's spatial zero-padding must stay 0
        # after the affine (relu(shift) != 0), so only the ReLU moves into the GEMM
        # prologue.  XLA fuses this elementwise op into the patch extraction.
        u = (y1[:M, :nInner].astype(jnp.float32) * s2[0, :nInner]
             + t2[0, :nInner]).astype(jnp.bfloat16)
        h = u.reshape(N, H, W, nInner)
        relu_in_gemm = True
    else:
        # bottleneck=False: the PyTorch block is a bare 3x3 conv (no BN / ReLU).
        h = x_nhwc.astype(jnp.bfloat16)
        relu_in_gemm = False
    a = _im2col_3x3(h)                                      # (M, 9*nInner) bf16
    y2 = conv_matmul(a, p['w3_p'], apply_relu=relu_in_gemm)  # (M, nout_p) f32
    return y2[:, :p['nOut']].reshape(N, H, W, p['nOut'])


def convnormal_fwd(p, x):
    """ConvNormal.forward: x (or [x]) in NCHW -> concat([x, ConvBN(x)], channel) NCHW."""
    x0 = x[0] if isinstance(x, (list, tuple)) else x
    x_nhwc = jnp.transpose(x0, (0, 2, 3, 1)).astype(jnp.float32)
    y = _convbn_normal_fwd(p, x_nhwc)
    out = jnp.concatenate([x_nhwc, y], axis=-1)
    return jnp.transpose(out, (0, 3, 1, 2))


# ----------------------------- pure-JAX reference ---------------------------------

def convnormal_reference(p, x_nchw):
    def bn_relu(h, g, b):
        mean = jnp.mean(h, axis=(0, 2, 3), keepdims=True)
        var = jnp.mean(jnp.square(h - mean), axis=(0, 2, 3), keepdims=True)
        y = (h - mean) * jax.lax.rsqrt(var + _EPS)
        y = y * g.reshape(1, -1, 1, 1) + b.reshape(1, -1, 1, 1)
        return jnp.maximum(y, 0.0)

    h = x_nchw.astype(jnp.float32)
    if p['bottleneck']:
        h = bn_relu(h, p['gamma1'], p['beta1'])
        h = jax.lax.conv_general_dilated(h, p['w1'], (1, 1), 'VALID',
                                         dimension_numbers=('NCHW', 'OIHW', 'NCHW'))
        h = bn_relu(h, p['gamma2'], p['beta2'])
    h = jax.lax.conv_general_dilated(h, p['w3'], (1, 1), ((1, 1), (1, 1)),
                                     dimension_numbers=('NCHW', 'OIHW', 'NCHW'))
    return jnp.concatenate([x_nchw, h], axis=1)


# ----------------------------- main -------------------------------------------------

if __name__ == "__main__":
    nIn, nOut, bottleneck, bnWidth = 4, 6, True, 1
    N, H = 2, 16

    key = jax.random.PRNGKey(0)
    kparam, kx = jax.random.split(key)
    params = make_convnormal(kparam, nIn, nOut, bottleneck, bnWidth)
    x = jax.random.normal(kx, (N, nIn, H, H), jnp.float32)

    fwd = jax.jit(lambda t: convnormal_fwd(params, t))
    out = jax.block_until_ready(fwd(x))

    assert out.shape == (N, nIn + nOut, H, H), out.shape
    assert bool(jnp.isfinite(out).all())

    ref = convnormal_reference(params, x)
    err = float(jnp.max(jnp.abs(out - ref)))
    tol = 3e-2 * (1.0 + float(jnp.max(jnp.abs(ref))))   # ~3% of output scale (bf16 GEMMs)
    assert err <= tol, f"max abs diff vs reference too large: {err} > {tol}"

    print("KERNEL_OK")
</pallas_src>

<mosaic_0001>
module attributes {stable_mosaic.version = 11 : i64} {
  func.func @_channel_stats_kernel(%arg0: i32, %arg1: memref<256x128xbf16, #tpu.memory_space<vmem>>, %arg2: memref<1x1x128xf32, #tpu.memory_space<vmem>>, %arg3: memref<1x1x128xf32, #tpu.memory_space<vmem>>) attributes {dimension_semantics = [#tpu.dimension_semantics<parallel>], iteration_bounds = array<i64: 2>, scalar_prefetch = 0 : i64, scratch_operands = 0 : i64, tpu.core_type = #tpu.core_type<tc>, window_params = [{transform_indices = @transform_0, window_bounds = array<i64: 256, 128>}, {transform_indices = @transform_1, window_bounds = array<i64: 1, 1, 128>}, {transform_indices = @transform_2, window_bounds = array<i64: 1, 1, 128>}]} {
    %c0 = arith.constant 0 : index
    %c0_0 = arith.constant 0 : index
    %0 = vector.load %arg1[%c0, %c0_0] : memref<256x128xbf16, #tpu.memory_space<vmem>>, vector<256x128xbf16>
    %1 = arith.extf %0 : vector<256x128xbf16> to vector<256x128xf32>
    %cst = arith.constant dense<0.000000e+00> : vector<128xf32>
    %2 = vector.multi_reduction <add>, %1, %cst [0] : vector<256x128xf32> to vector<128xf32>
    %3 = vector.shape_cast %2 : vector<128xf32> to vector<1x128xf32>
    %c0_1 = arith.constant 0 : index
    %c0_2 = arith.constant 0 : index
    %c0_3 = arith.constant 0 : index
    %4 = vector.load %arg2[%c0_1, %c0_2, %c0_3] : memref<1x1x128xf32, #tpu.memory_space<vmem>>, vector<1x1x128xf32>
    %5 = vector.shape_cast %4 : vector<1x1x128xf32> to vector<1x128xf32>
    %6 = vector.shape_cast %3 : vector<1x128xf32> to vector<1x1x128xf32>
    tpu.vector_store %arg2[%c0_1, %c0_2, %c0_3], %6 {strides = array<i32>} : memref<1x1x128xf32, #tpu.memory_space<vmem>>, vector<1x1x128xf32>,
    %7 = arith.mulf %1, %1 : vector<256x128xf32>
    %cst_4 = arith.constant dense<0.000000e+00> : vector<128xf32>
    %8 = vector.multi_reduction <add>, %7, %cst_4 [0] : vector<256x128xf32> to vector<128xf32>
    %9 = vector.shape_cast %8 : vector<128xf32> to vector<1x128xf32>
    %c0_5 = arith.constant 0 : index
    %c0_6 = arith.constant 0 : index
    %c0_7 = arith.constant 0 : index
    %10 = vector.load %arg3[%c0_5, %c0_6, %c0_7] : memref<1x1x128xf32, #tpu.memory_space<vmem>>, vector<1x1x128xf32>
    %11 = vector.shape_cast %10 : vector<1x1x128xf32> to vector<1x128xf32>
    %12 = vector.shape_cast %9 : vector<1x128xf32> to vector<1x1x128xf32>
    tpu.vector_store %arg3[%c0_5, %c0_6, %c0_7], %12 {strides = array<i32>} : memref<1x1x128xf32, #tpu.memory_space<vmem>>, vector<1x1x128xf32>,
    return
  }
  func.func @transform_0(%arg0: i32) -> (i32, i32) {
    %c0_i32 = arith.constant 0 : i32
    %c0_i32_0 = arith.constant 0 : i32
    return %arg0, %c0_i32 : i32, i32
  }
  func.func @transform_1(%arg0: i32) -> (i32, i32, i32) {
    %c0_i32 = arith.constant 0 : i32
    %c0_i32_0 = arith.constant 0 : i32
    %c0_i32_1 = arith.constant 0 : i32
    return %arg0, %c0_i32, %c0_i32_0 : i32, i32, i32
  }
  func.func @transform_2(%arg0: i32) -> (i32, i32, i32) {
    %c0_i32 = arith.constant 0 : i32
    %c0_i32_0 = arith.constant 0 : i32
    %c0_i32_1 = arith.constant 0 : i32
    return %arg0, %c0_i32, %c0_i32_0 : i32, i32, i32
  }
}

module attributes {stable_mosaic.version = 11 : i64} {
  func.func @_bn_relu_conv1x1_kernel(%arg0: i32, %arg1: memref<256x128xbf16, #tpu.memory_space<vmem>>, %arg2: memref<1x128xf32, #tpu.memory_space<vmem>>, %arg3: memref<1x128xf32, #tpu.memory_space<vmem>>, %arg4: memref<128x128xbf16, #tpu.memory_space<vmem>>, %arg5: memref<256x128xbf16, #tpu.memory_space<vmem>>, %arg6: memref<1x1x128xf32, #tpu.memory_space<vmem>>, %arg7: memref<1x1x128xf32, #tpu.memory_space<vmem>>) attributes {dimension_semantics = [#tpu.dimension_semantics<parallel>], iteration_bounds = array<i64: 2>, scalar_prefetch = 0 : i64, scratch_operands = 0 : i64, tpu.core_type = #tpu.core_type<tc>, window_params = [{transform_indices = @transform_0, window_bounds = array<i64: 256, 128>}, {pipeline_mode = #tpu.pipeline_mode<synchronous>, transform_indices = @transform_1, window_bounds = array<i64: 1, 128>}, {pipeline_mode = #tpu.pipeline_mode<synchronous>, transform_indices = @transform_2, window_bounds = array<i64: 1, 128>}, {pipeline_mode = #tpu.pipeline_mode<synchronous>, transform_indices = @transform_3, window_bounds = array<i64: 128, 128>}, {transform_indices = @transform_4, window_bounds = array<i64: 256, 128>}, {transform_indices = @transform_5, window_bounds = array<i64: 1, 1, 128>}, {transform_indices = @transform_6, window_bounds = array<i64: 1, 1, 128>}]} {
    %c0 = arith.constant 0 : index
    %c0_0 = arith.constant 0 : index
    %0 = vector.load %arg1[%c0, %c0_0] : memref<256x128xbf16, #tpu.memory_space<vmem>>, vector<256x128xbf16>
    %1 = arith.extf %0 : vector<256x128xbf16> to vector<256x128xf32>
    %c0_1 = arith.constant 0 : index
    %c0_2 = arith.constant 0 : index
    %2 = vector.load %arg2[%c0_1, %c0_2] : memref<1x128xf32, #tpu.memory_space<vmem>>, vector<1x128xf32>
    %3 = vector.broadcast %2 : vector<1x128xf32> to vector<256x128xf32>
    %4 = arith.mulf %1, %3 : vector<256x128xf32>
    %c0_3 = arith.constant 0 : index
    %c0_4 = arith.constant 0 : index
    %5 = vector.load %arg3[%c0_3, %c0_4] : memref<1x128xf32, #tpu.memory_space<vmem>>, vector<1x128xf32>
    %6 = vector.broadcast %5 : vector<1x128xf32> to vector<256x128xf32>
    %7 = arith.addf %4, %6 : vector<256x128xf32>
    %cst = arith.constant 0.000000e+00 : f32
    %8 = vector.broadcast %cst : f32 to vector<256x128xf32>
    %9 = arith.maximumf %7, %8 : vector<256x128xf32>
    %c256_i32 = arith.constant 256 : i32
    %10 = arith.muli %arg0, %c256_i32 : i32
    %11 = tpu.iota {dimensions = array<i32: 0>} : vector<256x128xi32>
    %12 = vector.broadcast %10 : i32 to vector<256x128xi32>
    %13 = arith.addi %12, %11 : vector<256x128xi32>
    %c512_i32 = arith.constant 512 : i32
    %14 = vector.broadcast %c512_i32 : i32 to vector<256x128xi32>
    %15 = arith.cmpi slt, %13, %14 : vector<256x128xi32>
    %cst_5 = arith.constant 0.000000e+00 : f32
    %16 = vector.broadcast %cst_5 : f32 to vector<256x128xf32>
    %17 = arith.select %15, %9, %16 : vector<256x128xi1>, vector<256x128xf32>
    %18 = arith.truncf %17 : vector<256x128xf32> to vector<256x128xbf16>
    %c0_6 = arith.constant 0 : index
    %c0_7 = arith.constant 0 : index
    %19 = vector.load %arg4[%c0_6, %c0_7] : memref<128x128xbf16, #tpu.memory_space<vmem>>, vector<128x128xbf16>
    %cst_8 = arith.constant dense<0.000000e+00> : vector<256x128xf32>
    %20 = tpu.matmul %18, %19, %cst_8 {dimension_numbers = #tpu.dot_dimension_numbers<[1], [0], [0], [1], [0, 0, 1, 1], [], []>} : vector<256x128xbf16>, vector<128x128xbf16>, vector<256x128xf32> -> vector<256x128xf32>
    %21 = arith.truncf %20 : vector<256x128xf32> to vector<256x128xbf16>
    %c0_9 = arith.constant 0 : index
    %c0_10 = arith.constant 0 : index
    %22 = vector.load %arg5[%c0_9, %c0_10] : memref<256x128xbf16, #tpu.memory_space<vmem>>, vector<256x128xbf16>
    tpu.vector_store %arg5[%c0_9, %c0_10], %21 {strides = array<i32>} : memref<256x128xbf16, #tpu.memory_space<vmem>>, vector<256x128xbf16>,
    %cst_11 = arith.constant dense<0.000000e+00> : vector<128xf32>
    %23 = vector.multi_reduction <add>, %20, %cst_11 [0] : vector<256x128xf32> to vector<128xf32>
    %24 = vector.shape_cast %23 : vector<128xf32> to vector<1x128xf32>
    %c0_12 = arith.constant 0 : index
    %c0_13 = arith.constant 0 : index
    %c0_14 = arith.constant 0 : index
    %25 = vector.load %arg6[%c0_12, %c0_13, %c0_14] : memref<1x1x128xf32, #tpu.memory_space<vmem>>, vector<1x1x128xf32>
    %26 = vector.shape_cast %25 : vector<1x1x128xf32> to vector<1x128xf32>
    %27 = vector.shape_cast %24 : vector<1x128xf32> to vector<1x1x128xf32>
    tpu.vector_store %arg6[%c0_12, %c0_13, %c0_14], %27 {strides = array<i32>} : memref<1x1x128xf32, #tpu.memory_space<vmem>>, vector<1x1x128xf32>,
    %28 = arith.mulf %20, %20 : vector<256x128xf32>
    %cst_15 = arith.constant dense<0.000000e+00> : vector<128xf32>
    %29 = vector.multi_reduction <add>, %28, %cst_15 [0] : vector<256x128xf32> to vector<128xf32>
    %30 = vector.shape_cast %29 : vector<128xf32> to vector<1x128xf32>
    %c0_16 = arith.constant 0 : index
    %c0_17 = arith.constant 0 : index
    %c0_18 = arith.constant 0 : index
    %31 = vector.load %arg7[%c0_16, %c0_17, %c0_18] : memref<1x1x128xf32, #tpu.memory_space<vmem>>, vector<1x1x128xf32>
    %32 = vector.shape_cast %31 : vector<1x1x128xf32> to vector<1x128xf32>
    %33 = vector.shape_cast %30 : vector<1x128xf32> to vector<1x1x128xf32>
    tpu.vector_store %arg7[%c0_16, %c0_17, %c0_18], %33 {strides = array<i32>} : memref<1x1x128xf32, #tpu.memory_space<vmem>>, vector<1x1x128xf32>,
    return
  }
  func.func @transform_0(%arg0: i32) -> (i32, i32) {
    %c0_i32 = arith.constant 0 : i32
    %c0_i32_0 = arith.constant 0 : i32
    return %arg0, %c0_i32 : i32, i32
  }
  func.func @transform_1(%arg0: i32) -> (i32, i32) {
    %c0_i32 = arith.constant 0 : i32
    %c0_i32_0 = arith.constant 0 : i32
    %c0_i32_1 = arith.constant 0 : i32
    return %c0_i32, %c0_i32_0 : i32, i32
  }
  func.func @transform_2(%arg0: i32) -> (i32, i32) {
    %c0_i32 = arith.constant 0 : i32
    %c0_i32_0 = arith.constant 0 : i32
    %c0_i32_1 = arith.constant 0 : i32
    return %c0_i32, %c0_i32_0 : i32, i32
  }
  func.func @transform_3(%arg0: i32) -> (i32, i32) {
    %c0_i32 = arith.constant 0 : i32
    %c0_i32_0 = arith.constant 0 : i32
    %c0_i32_1 = arith.constant 0 : i32
    return %c0_i32, %c0_i32_0 : i32, i32
  }
  func.func @transform_4(%arg0: i32) -> (i32, i32) {
    %c0_i32 = arith.constant 0 : i32
    %c0_i32_0 = arith.constant 0 : i32
    return %arg0, %c0_i32 : i32, i32
  }
  func.func @transform_5(%arg0: i32) -> (i32, i32, i32) {
    %c0_i32 = arith.constant 0 : i32
    %c0_i32_0 = arith.constant 0 : i32
    %c0_i32_1 = arith.constant 0 : i32
    return %arg0, %c0_i32, %c0_i32_0 : i32, i32, i32
  }
  func.func @transform_6(%arg0: i32) -> (i32, i32, i32) {
    %c0_i32 = arith.constant 0 : i32
    %c0_i32_0 = arith.constant 0 : i32
    %c0_i32_1 = arith.constant 0 : i32
    return %arg0, %c0_i32, %c0_i32_0 : i32, i32, i32
  }
}

module attributes {stable_mosaic.version = 11 : i64} {
  func.func @_conv_matmul_kernel(%arg0: i32, %arg1: memref<256x128xbf16, #tpu.memory_space<vmem>>, %arg2: memref<128x128xbf16, #tpu.memory_space<vmem>>, %arg3: memref<256x128xf32, #tpu.memory_space<vmem>>) attributes {dimension_semantics = [#tpu.dimension_semantics<parallel>], iteration_bounds = array<i64: 2>, scalar_prefetch = 0 : i64, scratch_operands = 0 : i64, tpu.core_type = #tpu.core_type<tc>, window_params = [{transform_indices = @transform_0, window_bounds = array<i64: 256, 128>}, {pipeline_mode = #tpu.pipeline_mode<synchronous>, transform_indices = @transform_1, window_bounds = array<i64: 128, 128>}, {transform_indices = @transform_2, window_bounds = array<i64: 256, 128>}]} {
    %c0 = arith.constant 0 : index
    %c0_0 = arith.constant 0 : index
    %0 = vector.load %arg1[%c0, %c0_0] : memref<256x128xbf16, #tpu.memory_space<vmem>>, vector<256x128xbf16>
    %cst = arith.constant 0.000000e+00 : bf16
    %1 = vector.broadcast %cst : bf16 to vector<256x128xbf16>
    %2 = arith.maximumf %0, %1 : vector<256x128xbf16>
    %c0_1 = arith.constant 0 : index
    %c0_2 = arith.constant 0 : index
    %3 = vector.load %arg2[%c0_1, %c0_2] : memref<128x128xbf16, #tpu.memory_space<vmem>>, vector<128x128xbf16>
    %cst_3 = arith.constant dense<0.000000e+00> : vector<256x128xf32>
    %4 = tpu.matmul %2, %3, %cst_3 {dimension_numbers = #tpu.dot_dimension_numbers<[1], [0], [0], [1], [0, 0, 1, 1], [], []>} : vector<256x128xbf16>, vector<128x128xbf16>, vector<256x128xf32> -> vector<256x128xf32>
    %c0_4 = arith.constant 0 : index
    %c0_5 = arith.constant 0 : index
    %5 = vector.load %arg3[%c0_4, %c0_5] : memref<256x128xf32, #tpu.memory_space<vmem>>, vector<256x128xf32>
    tpu.vector_store %arg3[%c0_4, %c0_5], %4 {strides = array<i32>} : memref<256x128xf32, #tpu.memory_space<vmem>>, vector<256x128xf32>,
    return
  }
  func.func @transform_0(%arg0: i32) -> (i32, i32) {
    %c0_i32 = arith.constant 0 : i32
    %c0_i32_0 = arith.constant 0 : i32
    return %arg0, %c0_i32 : i32, i32
  }
  func.func @transform_1(%arg0: i32) -> (i32, i32) {
    %c0_i32 = arith.constant 0 : i32
    %c0_i32_0 = arith.constant 0 : i32
    %c0_i32_1 = arith.constant 0 : i32
    return %c0_i32, %c0_i32_0 : i32, i32
  }
  func.func @transform_2(%arg0: i32) -> (i32, i32) {
    %c0_i32 = arith.constant 0 : i32
    %c0_i32_0 = arith.constant 0 : i32
    return %arg0, %c0_i32 : i32, i32
  }
}

</mosaic_0001>

<bundles_post_ra>
// kernel: _lambda_.3
= control target key start
LH: loop header
LB: loop body
LE: loop exit
PB: predicated region body
PF: predicated region fallthrough
CT: control target
= control target key end

     0   :  { %s514_s9 = smov 0   ;;  %s557_s0 = inlined_call_operand.vmem [shape: bf16[512,128], index: 0, kind: input, shape index: {}]   ;;  %s558_s1 = inlined_call_operand.vmem [shape: f32[2,1,128], index: 1, kind: output, shape index: {0}]   ;;  %s559_s2 = inlined_call_operand.vmem [shape: f32[2,1,128], index: 2, kind: output, shape index: {1}]  }
   0x1 LB: > { %s520_s10 = sadd.s32 4294967295, %s497_s9   ;;  %p399_p0 = scmp.ge.s32.totalorder %s497_s9, 1  ;;  %s497_s9 = sphi %s514_s9, %s13_s9  }
   0x2   : > { %p116_p1 = scmp.lt.s32.totalorder %s497_s9, 3 }
   0x4   : > { %p117_p2 = pnand %p399_p0, %p116_p1 }
   0x5   : > { %s400_s11 = sshll.u32 (!%p117_p2), %s520_s10, 5  ;;  %p145_p4 = scmp.lt.s32.totalorder (!%p117_p2), %s520_s10, 1 }
   0x6   : > { %120 = sbr.rel (%p117_p2) target bundleno = 94 (0x5e), region = 24  ;;  %p140_p3 = scmp.lt.s32.totalorder (!%p117_p2), %s400_s11, 63 }
   0xb   : > { %s561_s11 = smov (!%p140_p3, %s400_s11), 63  ;;  %s563_s10 = smov (!%p145_p4, %s520_s10), 1 }
   0xc   : > { %s401_s12 = sshll.u32 %s561_s11, 2  ;;  %s147_s18 = scalar_lea.vmem %s558_s1, %s563_s10 }
   0xd   : > { %s528_s15 = scalar_lea.vmem %s557_s0, %s401_s12  ;;  %s150_s21 = scalar_lea.vmem %s559_s2, %s563_s10 }
   0xe   : > { %v405_v0 = vld [vmem:[%s528_s15] sm:$0xff]   ;;  %v468_v1 = vld [vmem:[%s528_s15 + $0x8] sm:$0xff]   ;;  %v469_v5 = vld [vmem:[%s528_s15 + $0x10] sm:$0xff]  }
   0xf   : > { %v406_v2 = vunpack.c.l.bf16 %v405_v0  ;;  %v407_v3 = vunpack.c.h.bf16 %v405_v0  ;;  %v410_v4 = vunpack.c.l.bf16 %v468_v1  ;;  %v411_v7 = vunpack.c.h.bf16 %v468_v1  ;;  %v470_v13 = vld [vmem:[%s528_s15 + $0x18] sm:$0xff]   ;;  %v471_v22 = vld [vmem:[%s528_s15 + $0x20] sm:$0xff]   ;;  %v472_v31 = vld [vmem:[%s528_s15 + $0x28] sm:$0xff]  }
  0x10   : > { %v414_v11 = vunpack.c.l.bf16 %v469_v5  ;;  %v415_v15 = vunpack.c.h.bf16 %v469_v5  ;;  %v418_v19 = vunpack.c.l.bf16 %v470_v13  ;;  %v419_v24 = vunpack.c.h.bf16 %v470_v13  ;;  %v473_v40 = vld [vmem:[%s528_s15 + $0x30] sm:$0xff]   ;;  %v474_v49 = vld [vmem:[%s528_s15 + $0x38] sm:$0xff]   ;;  %v475_v58 = vld [vmem:[%s528_s15 + $0x40] sm:$0xff]  }
  0x11   : > { %v215_v6 = vadd.f32 %v407_v3, %v406_v2  ;;  %v253_v8 = vmul.f32 %v406_v2, %v406_v2  ;;  %v254_v9 = vmul.f32 %v407_v3, %v407_v3  ;;  %v255_v12 = vmul.f32 %v410_v4, %v410_v4  ;;  %v476_v3 = vld [vmem:[%s528_s15 + $0x48] sm:$0xff]  }
  0x12   : > { %v256_v16 = vmul.f32 %v411_v7, %v411_v7  ;;  %v257_v20 = vmul.f32 %v414_v11, %v414_v11  ;;  %v258_v25 = vmul.f32 %v415_v15, %v415_v15  ;;  %v422_v28 = vunpack.c.l.bf16 %v471_v22 }
  0x13   : > { %v216_v10 = vadd.f32 %v410_v4, %v215_v6  ;;  %v285_v17 = vadd.f32 %v254_v9, %v253_v8  ;;  %v259_v29 = vmul.f32 %v418_v19, %v418_v19  ;;  %v423_v33 = vunpack.c.h.bf16 %v471_v22 }
  0x14   : > { %v260_v34 = vmul.f32 %v419_v24, %v419_v24  ;;  %v426_v37 = vunpack.c.l.bf16 %v472_v31  ;;  %v261_v38 = vmul.f32 %v422_v28, %v422_v28  ;;  %v427_v42 = vunpack.c.h.bf16 %v472_v31 }
  0x15   : > { %v217_v14 = vadd.f32 %v411_v7, %v216_v10  ;;  %v286_v21 = vadd.f32 %v285_v17, %v255_v12  ;;  %v262_v43 = vmul.f32 %v423_v33, %v423_v33  ;;  %v430_v46 = vunpack.c.l.bf16 %v473_v40  ;;  %v477_v12 = vld [vmem:[%s528_s15 + $0x50] sm:$0xff]  }
  0x16   : > { %v263_v47 = vmul.f32 %v426_v37, %v426_v37  ;;  %v431_v51 = vunpack.c.h.bf16 %v473_v40  ;;  %v264_v52 = vmul.f32 %v427_v42, %v427_v42  ;;  %v434_v55 = vunpack.c.l.bf16 %v474_v49 }
  0x17   : > { %v218_v18 = vadd.f32 %v414_v11, %v217_v14  ;;  %v287_v26 = vadd.f32 %v286_v21, %v256_v16  ;;  %v265_v56 = vmul.f32 %v430_v46, %v430_v46  ;;  %v435_v60 = vunpack.c.h.bf16 %v474_v49  ;;  %v478_v21 = vld [vmem:[%s528_s15 + $0x58] sm:$0xff]  }
  0x18   : > { %v266_v61 = vmul.f32 %v431_v51, %v431_v51  ;;  %v438_v0 = vunpack.c.l.bf16 %v475_v58  ;;  %v267_v1 = vmul.f32 %v434_v55, %v434_v55  ;;  %v439_v5 = vunpack.c.h.bf16 %v475_v58 }
  0x19   : > { %v219_v23 = vadd.f32 %v415_v15, %v218_v18  ;;  %v288_v30 = vadd.f32 %v287_v26, %v257_v20  ;;  %v268_v6 = vmul.f32 %v435_v60, %v435_v60  ;;  %v442_v9 = vunpack.c.l.bf16 %v476_v3 }
  0x1a   : > { %v269_v10 = vmul.f32 %v438_v0, %v438_v0  ;;  %v443_v14 = vunpack.c.h.bf16 %v476_v3  ;;  %v270_v15 = vmul.f32 %v439_v5, %v439_v5  ;;  %v446_v18 = vunpack.c.l.bf16 %v477_v12 }
  0x1b   : > { %v220_v27 = vadd.f32 %v418_v19, %v219_v23  ;;  %v289_v35 = vadd.f32 %v288_v30, %v258_v25  ;;  %v271_v19 = vmul.f32 %v442_v9, %v442_v9  ;;  %v447_v23 = vunpack.c.h.bf16 %v477_v12  ;;  %v479_v30 = vld [vmem:[%s528_s15 + $0x60] sm:$0xff]  }
  0x1d   : > { %v221_v32 = vadd.f32 %v419_v24, %v220_v27  ;;  %v290_v39 = vadd.f32 %v289_v35, %v259_v29  ;;  %v272_v24 = vmul.f32 %v443_v14, %v443_v14  ;;  %v450_v27 = vunpack.c.l.bf16 %v478_v21 }
  0x1f   : > { %v222_v36 = vadd.f32 %v422_v28, %v221_v32  ;;  %v291_v44 = vadd.f32 %v290_v39, %v260_v34  ;;  %v273_v28 = vmul.f32 %v446_v18, %v446_v18  ;;  %v451_v32 = vunpack.c.h.bf16 %v478_v21  ;;  %v480_v39 = vld [vmem:[%s528_s15 + $0x68] sm:$0xff]  }
  0x21   : > { %v223_v41 = vadd.f32 %v423_v33, %v222_v36  ;;  %v292_v48 = vadd.f32 %v291_v44, %v261_v38  ;;  %v274_v33 = vmul.f32 %v447_v23, %v447_v23  ;;  %v454_v36 = vunpack.c.l.bf16 %v479_v30 }
  0x23   : > { %v224_v45 = vadd.f32 %v426_v37, %v223_v41  ;;  %v293_v53 = vadd.f32 %v292_v48, %v262_v43  ;;  %v275_v37 = vmul.f32 %v450_v27, %v450_v27  ;;  %v455_v41 = vunpack.c.h.bf16 %v479_v30  ;;  %v481_v48 = vld [vmem:[%s528_s15 + $0x70] sm:$0xff]  }
  0x25   : > { %v225_v50 = vadd.f32 %v427_v42, %v224_v45  ;;  %v294_v57 = vadd.f32 %v293_v53, %v263_v47  ;;  %v276_v42 = vmul.f32 %v451_v32, %v451_v32  ;;  %v458_v45 = vunpack.c.l.bf16 %v480_v39 }
  0x27   : > { %v226_v54 = vadd.f32 %v430_v46, %v225_v50  ;;  %v295_v62 = vadd.f32 %v294_v57, %v264_v52  ;;  %v277_v46 = vmul.f32 %v454_v36, %v454_v36  ;;  %v459_v50 = vunpack.c.h.bf16 %v480_v39  ;;  %v482_v57 = vld [vmem:[%s528_s15 + $0x78] sm:$0xff]  }
  0x28   : > { %v467_v3 = vunpack.c.h.bf16 %v482_v57 }
  0x29   : > { %v227_v59 = vadd.f32 %v431_v51, %v226_v54  ;;  %v296_v2 = vadd.f32 %v295_v62, %v265_v56  ;;  %v278_v51 = vmul.f32 %v455_v41, %v455_v41  ;;  %v462_v54 = vunpack.c.l.bf16 %v481_v48 }
  0x2b   : > { %v228_v63 = vadd.f32 %v434_v55, %v227_v59  ;;  %v297_v7 = vadd.f32 %v296_v2, %v266_v61  ;;  %v279_v55 = vmul.f32 %v458_v45, %v458_v45  ;;  %v463_v59 = vunpack.c.h.bf16 %v481_v48 }
  0x2d   : > { %v229_v4 = vadd.f32 %v435_v60, %v228_v63  ;;  %v298_v11 = vadd.f32 %v297_v7, %v267_v1  ;;  %v280_v60 = vmul.f32 %v459_v50, %v459_v50  ;;  %v466_v63 = vunpack.c.l.bf16 %v482_v57 }
  0x2f   : > { %v230_v8 = vadd.f32 %v438_v0, %v229_v4  ;;  %v299_v16 = vadd.f32 %v298_v11, %v268_v6  ;;  %v281_v0 = vmul.f32 %v462_v54, %v462_v54  ;;  %v282_v4 = vmul.f32 %v463_v59, %v463_v59 }
  0x30   : > { %v283_v7 = vmul.f32 %v466_v63, %v466_v63 }
  0x31   : > { %v231_v13 = vadd.f32 %v439_v5, %v230_v8  ;;  %v300_v20 = vadd.f32 %v299_v16, %v269_v10  ;;  %v284_v10 = vmul.f32 %v467_v3, %v467_v3 }
  0x33   : > { %v232_v17 = vadd.f32 %v442_v9, %v231_v13  ;;  %v301_v25 = vadd.f32 %v300_v20, %v270_v15 }
  0x35   : > { %v233_v22 = vadd.f32 %v443_v14, %v232_v17  ;;  %v302_v29 = vadd.f32 %v301_v25, %v271_v19 }
  0x37   : > { %v234_v26 = vadd.f32 %v446_v18, %v233_v22  ;;  %v303_v34 = vadd.f32 %v302_v29, %v272_v24 }
  0x39   : > { %v235_v31 = vadd.f32 %v447_v23, %v234_v26  ;;  %v304_v38 = vadd.f32 %v303_v34, %v273_v28 }
  0x3b   : > { %v236_v35 = vadd.f32 %v450_v27, %v235_v31  ;;  %v305_v43 = vadd.f32 %v304_v38, %v274_v33 }
  0x3d   : > { %v237_v40 = vadd.f32 %v451_v32, %v236_v35  ;;  %v306_v47 = vadd.f32 %v305_v43, %v275_v37 }
  0x3f   : > { %v238_v44 = vadd.f32 %v454_v36, %v237_v40  ;;  %v307_v52 = vadd.f32 %v306_v47, %v276_v42 }
  0x41   : > { %v239_v49 = vadd.f32 %v455_v41, %v238_v44  ;;  %v308_v56 = vadd.f32 %v307_v52, %v277_v46 }
  0x43   : > { %v240_v53 = vadd.f32 %v458_v45, %v239_v49  ;;  %v309_v61 = vadd.f32 %v308_v56, %v278_v51 }
  0x45   : > { %v241_v58 = vadd.f32 %v459_v50, %v240_v53  ;;  %v310_v1 = vadd.f32 %v309_v61, %v279_v55 }
  0x47   : > { %v242_v62 = vadd.f32 %v462_v54, %v241_v58  ;;  %v311_v5 = vadd.f32 %v310_v1, %v280_v60 }
  0x49   : > { %v243_v2 = vadd.f32 %v463_v59, %v242_v62  ;;  %v312_v8 = vadd.f32 %v311_v5, %v281_v0 }
  0x4b   : > { %v244_v6 = vadd.f32 %v466_v63, %v243_v2  ;;  %v313_v11 = vadd.f32 %v312_v8, %v282_v4 }
  0x4d   : > { %v245_v9 = vadd.f32 %v467_v3, %v244_v6  ;;  %v314_v13 = vadd.f32 %v313_v11, %v283_v7 }
  0x4f   : > { %v246_v12 = vrot.slane %v245_v9, 4  ;;  %v315_v15 = vadd.f32 %v314_v13, %v284_v10 }
  0x51   : > { %v247_v14 = vadd.f32 %v246_v12, %v245_v9  ;;  %v316_v17 = vrot.slane %v315_v15, 4 }
  0x53   : > { %v248_v16 = vrot.slane %v247_v14, 2  ;;  %v317_v19 = vadd.f32 %v316_v17, %v315_v15 }
  0x55   : > { %v249_v18 = vadd.f32 %v248_v16, %v247_v14  ;;  %v318_v21 = vrot.slane %v317_v19, 2 }
  0x57   : > { %v250_v20 = vrot.slane %v249_v18, 1  ;;  %v319_v23 = vadd.f32 %v318_v21, %v317_v19 }
  0x59   : > { %v251_v22 = vadd.f32 %v250_v20, %v249_v18  ;;  %v320_v24 = vrot.slane %v319_v23, 1 }
  0x5b   : > { %252 = vst [vmem:[%s147_s18] sm:$0x1] %v251_v22  ;;  %v321_v25 = vadd.f32 %v320_v24, %v319_v23 }
  0x5d   : > { %322 = vst [vmem:[%s150_s21] sm:$0x1] %v321_v25 }
  0x5e PF: > { %s13_s9 = sadd.s32 1, %s497_s9  }
  0x5f   : > { %p10_p5 = scmp.ge.s32.totalorder %s13_s9, 4  }
  0x61   :  { %12 = sbr.rel (!%p10_p5) target bundleno = 1 (0x1), region = 66 }

// kernel: _lambda_.4
= control target key start
LH: loop header
LB: loop body
LE: loop exit
PB: predicated region body
PF: predicated region fallthrough
CT: control target
= control target key end

     0   :  { %s1369_s21 = smov 0   ;;  %s1766_s0 = inlined_call_operand.vmem [shape: bf16[512,128], index: 0, kind: input, shape index: {}]   ;;  %s1767_s1 = inlined_call_operand.vmem [shape: f32[1,128], index: 1, kind: input, shape index: {}]   ;;  %s1768_s2 = inlined_call_operand.vmem [shape: f32[1,128], index: 2, kind: input, shape index: {}]   ;;  %s1769_s3 = inlined_call_operand.vmem [shape: bf16[128,128], index: 3, kind: input, shape index: {}]   ;;  %s1770_s4 = inlined_call_operand.vmem [shape: bf16[512,128], index: 4, kind: output, shape index: {0}]   ;;  %s1771_s5 = inlined_call_operand.vmem [shape: f32[2,1,128], index: 5, kind: output, shape index: {1}]   ;;  %s1772_s6 = inlined_call_operand.vmem [shape: f32[2,1,128], index: 6, kind: output, shape index: {2}]  }
   0x1 LB: > { %s1375_s22 = sadd.s32 4294967295, %s1332_s21   ;;  %p1022_p0 = scmp.ge.s32.totalorder %s1332_s21, 1  ;;  %s1332_s21 = sphi %s1369_s21, %s17_s21  }
   0x2   : > { %p218_p1 = scmp.lt.s32.totalorder %s1332_s21, 3 }
   0x4   : > { %p219_p2 = pnand %p1022_p0, %p218_p1 }
   0x5   : > { %s1023_s25 = sshll.u32 (!%p219_p2), %s1375_s22, 5  ;;  %s1027_s14 = sshll.u32 (!%p219_p2), %s1375_s22, 8 }
   0x6   : > { %222 = sbr.rel (%p219_p2) target bundleno = 290 (0x122), region = 36  ;;  %p255_p3 = scmp.lt.s32.totalorder (!%p219_p2), %s1023_s25, 63 }
   0x7   : > { %p266_p4 = scmp.lt.s32.totalorder (!%p219_p2), %s1375_s22, 1 }
   0xb   : > { %v1117_v0 = vld [vmem:[%s1769_s3 + $0x38] sm:$0xff]  ;;  %v1116_v1 = vld [vmem:[%s1769_s3 + $0x30] sm:$0xff]  ;;  %s1782_s25 = smov (!%p255_p3, %s1023_s25), 63  ;;  %v1115_v2 = vld [vmem:[%s1769_s3 + $0x28] sm:$0xff]  ;;  %v441_v4 = vlaneseq  ;;  %v1423_v20 = vstv %s1027_s14  ;;  %s1784_s22 = smov (!%p266_p4, %s1375_s22), 1 }
   0xc   : > { %651 = vmatpush.bf16.msra.mxu0 %v1117_v0  ;;  %1292 = vmatpush.bf16.msra.mxu1 %v1117_v0  ;;  %s1024_s28 = sshll.u32 %s1782_s25, 2  ;;  %v1114_v5 = vld [vmem:[%s1769_s3 + $0x20] sm:$0xff]  ;;  %v1113_v14 = vld [vmem:[%s1769_s3 + $0x18] sm:$0xff]  ;;  %v1112_v25 = vld [vmem:[%s1769_s3 + $0x10] sm:$0xff]  ;;  %s268_s8 = scalar_lea.vmem %s1771_s5, %s1784_s22 }
   0xd   : > { %1293 = vmatpush.bf16.msra.mxu2 %v1117_v0  ;;  %1294 = vmatpush.bf16.msra.mxu3 %v1117_v0  ;;  %s1397_s9 = scalar_lea.vmem %s1766_s0, %s1024_s28  ;;  %v1407_v9 = vld [vmem:[%s1767_s1] ss:$0 sm:$0xff]  ;;  %v1411_v11 = vshrl.u32 %v441_v4, 7  ;;  %v1111_v40 = vld [vmem:[%s1769_s3 + $0x8] sm:$0xff]  ;;  %s1627_s7 = scalar_lea.vmem %s1770_s4, %s1024_s28 }
   0xe   : > { %v1119_v3 = vld [vmem:[%s1397_s9] sm:$0xff]   ;;  %v1262_v32 = vld [vmem:[%s1397_s9 + $0x8] sm:$0xff]   ;;  %s271_s11 = scalar_lea.vmem %s1772_s6, %s1784_s22 }
   0xf   : > { %v1265_v6 = vld [vmem:[%s1397_s9 + $0x20] sm:$0xff]   ;;  %v1120_v7 = vunpack.c.l.bf16 %v1119_v3  ;;  %v1121_v8 = vunpack.c.h.bf16 %v1119_v3  ;;  %v443_v21 = vadd.s32 8, %v1411_v11  ;;  %v450_v24 = vadd.s32 64, %v1411_v11  ;;  %v1266_v51 = vld [vmem:[%s1397_s9 + $0x28] sm:$0xff]  }
  0x10   : > { %652 = vmatpush.bf16.msra.mxu0 %v1116_v1  ;;  %1295 = vmatpush.bf16.msra.mxu1 %v1116_v1  ;;  %v1269_v10 = vld [vmem:[%s1397_s9 + $0x40] sm:$0xff]   ;;  %v1136_v12 = vunpack.c.l.bf16 %v1265_v6  ;;  %v1137_v13 = vunpack.c.h.bf16 %v1265_v6  ;;  %v451_v26 = vadd.s32 72, %v1411_v11  ;;  %v475_v31 = vadd.s32 %v1423_v20, %v1411_v11  ;;  %v1270_v58 = vld [vmem:[%s1397_s9 + $0x48] sm:$0xff]  }
  0x11   : > { %1296 = vmatpush.bf16.msra.mxu2 %v1116_v1  ;;  %1297 = vmatpush.bf16.msra.mxu3 %v1116_v1  ;;  %v1152_v15 = vunpack.c.l.bf16 %v1269_v10  ;;  %v1153_v16 = vunpack.c.h.bf16 %v1269_v10  ;;  %v340_v17 = vmul.f32 %v1407_v9, %v1120_v7  ;;  %v341_v18 = vmul.f32 %v1407_v9, %v1121_v8  ;;  %v1421_v19 = vld [vmem:[%s1768_s2] ss:$0 sm:$0xff] }
  0x12   : > { %v348_v22 = vmul.f32 %v1407_v9, %v1136_v12  ;;  %v349_v23 = vmul.f32 %v1407_v9, %v1137_v13  ;;  %v444_v33 = vadd.s32 16, %v1411_v11  ;;  %v458_v34 = vadd.s32 128, %v1411_v11  ;;  %v1273_v52 = vld [vmem:[%s1397_s9 + $0x60] sm:$0xff]  }
  0x13   : > { %v356_v27 = vmul.f32 %v1407_v9, %v1152_v15  ;;  %v357_v28 = vmul.f32 %v1407_v9, %v1153_v16  ;;  %v376_v29 = vadd.f32 %v1421_v19, %v340_v17  ;;  %v377_v30 = vadd.f32 %v1421_v19, %v341_v18  ;;  %v1110_v55 = vld [vmem:[%s1769_s3] sm:$0xff] }
  0x14   : > { %653 = vmatpush.bf16.msra.mxu0 %v1115_v2  ;;  %1298 = vmatpush.bf16.msra.mxu1 %v1115_v2  ;;  %v459_v35 = vadd.s32 136, %v1411_v11  ;;  %v476_v36 = vadd.s32 %v1423_v20, %v443_v21  ;;  %v384_v37 = vadd.f32 %v1421_v19, %v348_v22  ;;  %v385_v38 = vadd.f32 %v1421_v19, %v349_v23 }
  0x15   : > { %1299 = vmatpush.bf16.msra.mxu2 %v1115_v2  ;;  %1300 = vmatpush.bf16.msra.mxu3 %v1115_v2  ;;  %v483_v39 = vadd.s32 %v1423_v20, %v450_v24  ;;  %v484_v41 = vadd.s32 %v1423_v20, %v451_v26  ;;  %v392_v42 = vadd.f32 %v1421_v19, %v356_v27  ;;  %v408_v44 = vmax.f32 %v376_v29, 0.0 }
  0x16   : > { %v393_v43 = vadd.f32 %v1421_v19, %v357_v28  ;;  %v409_v45 = vmax.f32 %v377_v30, 0.0  ;;  %v1124_v46 = vunpack.c.l.bf16 %v1262_v32  ;;  %v1125_v47 = vunpack.c.h.bf16 %v1262_v32 }
  0x17   : > { %vm507_vm0 = vcmp.lt.s32.totalorder %v475_v31, 512  ;;  %v1454_v48 = vadd.s32 %v1423_v20, %v444_v33  ;;  %v491_v49 = vadd.s32 %v1423_v20, %v458_v34  ;;  %v492_v50 = vadd.s32 %v1423_v20, %v459_v35  ;;  %v1263_v35 = vld [vmem:[%s1397_s9 + $0x10] sm:$0xff]  }
  0x18   : > { %654 = vmatpush.bf16.msra.mxu0 %v1114_v5  ;;  %1301 = vmatpush.bf16.msra.mxu1 %v1114_v5  ;;  %vm508_vm1 = vcmp.lt.s32.totalorder %v476_v36, 512  ;;  %v416_v53 = vmax.f32 %v384_v37, 0.0  ;;  %v417_v54 = vmax.f32 %v385_v38, 0.0  ;;  %vm515_vm2 = vcmp.lt.s32.totalorder %v483_v39, 512 }
  0x19   : > { %1302 = vmatpush.bf16.msra.mxu2 %v1114_v5  ;;  %1303 = vmatpush.bf16.msra.mxu3 %v1114_v5  ;;  %vm516_vm3 = vcmp.lt.s32.totalorder %v484_v41, 512  ;;  %v424_v56 = vmax.f32 %v392_v42, 0.0  ;;  %v425_v57 = vmax.f32 %v393_v43, 0.0  ;;  %v1168_v59 = vunpack.c.l.bf16 %v1273_v52  ;;  %vm1469_vm6 = vmpackc.low %vm508_vm1, %vm507_vm0 }
  0x1a   : > { %v1061_v60 = vpack.c.bf16 %v409_v45, %v408_v44  ;;  %v342_v61 = vmul.f32 %v1407_v9, %v1124_v46  ;;  %v343_v62 = vmul.f32 %v1407_v9, %v1125_v47  ;;  %v1140_v63 = vunpack.c.l.bf16 %v1266_v51  ;;  %vm1475_vm7 = vmpackc.low %vm516_vm3, %vm515_vm2 }
  0x1b   : > { %vm523_vm4 = vcmp.lt.s32.totalorder %v491_v49, 512  ;;  %vm524_vm5 = vcmp.lt.s32.totalorder %v492_v50, 512  ;;  %v1169_v0 = vunpack.c.h.bf16 %v1273_v52  ;;  %v364_v1 = vmul.f32 %v1407_v9, %v1168_v59  ;;  %v1274_v52 = vld [vmem:[%s1397_s9 + $0x68] sm:$0xff]   ;;  %v1271_v59 = vld [vmem:[%s1397_s9 + $0x50] sm:$0xff]  }
  0x1c   : > { %655 = vmatpush.bf16.msra.mxu0 %v1113_v14  ;;  %1304 = vmatpush.bf16.msra.mxu1 %v1113_v14  ;;  %v1073_v3 = vpack.c.bf16 %v417_v54, %v416_v53  ;;  %v1141_v4 = vunpack.c.h.bf16 %v1266_v51  ;;  %v1156_v5 = vunpack.c.l.bf16 %v1270_v58  ;;  %v1157_v6 = vunpack.c.h.bf16 %v1270_v58  ;;  %vm1084_vm8 = vmpackc.low %vm524_vm5, %vm523_vm4  ;;  %v1267_v51 = vld [vmem:[%s1397_s9 + $0x30] sm:$0xff]  }
  0x1d   : > { %1305 = vmatpush.bf16.msra.mxu2 %v1113_v14  ;;  %1306 = vmatpush.bf16.msra.mxu3 %v1113_v14  ;;  %v1085_v8 = vpack.c.bf16 %v425_v57, %v424_v56  ;;  %v365_v10 = vmul.f32 %v1407_v9, %v1169_v0  ;;  %v400_v12 = vadd.f32 %v1421_v19, %v364_v1  ;;  %v466_v13 = vadd.s32 192, %v1411_v11 }
  0x1e   : > { %v378_v14 = vadd.f32 %v1421_v19, %v342_v61  ;;  %v379_v15 = vadd.f32 %v1421_v19, %v343_v62  ;;  %v445_v16 = vadd.s32 24, %v1411_v11  ;;  %v350_v17 = vmul.f32 %v1407_v9, %v1140_v63 }
  0x1f   : > { %v401_v18 = vadd.f32 %v1421_v19, %v365_v10  ;;  %v432_v21 = vmax.f32 %v400_v12, 0.0  ;;  %v467_v22 = vadd.s32 200, %v1411_v11  ;;  %v499_v23 = vadd.s32 %v1423_v20, %v466_v13 }
  0x20   : > { %656 = vmatpush.bf16.msra.mxu0 %v1112_v25  ;;  %1307 = vmatpush.bf16.msra.mxu1 %v1112_v25  ;;  %v351_v24 = vmul.f32 %v1407_v9, %v1141_v4  ;;  %v358_v26 = vmul.f32 %v1407_v9, %v1156_v5  ;;  %v359_v27 = vmul.f32 %v1407_v9, %v1157_v6  ;;  %v453_v28 = vadd.s32 88, %v1411_v11 }
  0x21   : > { %1308 = vmatpush.bf16.msra.mxu2 %v1112_v25  ;;  %1309 = vmatpush.bf16.msra.mxu3 %v1112_v25  ;;  %v452_v25 = vadd.s32 80, %v1411_v11  ;;  %v433_v29 = vmax.f32 %v401_v18, 0.0  ;;  %v500_v30 = vadd.s32 %v1423_v20, %v467_v22  ;;  %vm531_vm9 = vcmp.lt.s32.totalorder %v499_v23, 512 }
  0x22   : > { %v410_v31 = vmax.f32 %v378_v14, 0.0  ;;  %v411_v32 = vmax.f32 %v379_v15, 0.0  ;;  %v478_v33 = vadd.s32 %v1423_v20, %v445_v16  ;;  %v386_v34 = vadd.f32 %v1421_v19, %v350_v17 }
  0x23   : > { %v460_v36 = vadd.s32 144, %v1411_v11  ;;  %v461_v37 = vadd.s32 152, %v1411_v11  ;;  %vm532_vm10 = vcmp.lt.s32.totalorder %v500_v30, 512  ;;  %v1097_v38 = vpack.c.bf16 %v433_v29, %v432_v21 }
  0x24   : > { %657 = vmatpush.bf16.msra.mxu0 %v1111_v40  ;;  %1310 = vmatpush.bf16.msra.mxu1 %v1111_v40  ;;  %v387_v39 = vadd.f32 %v1421_v19, %v351_v24  ;;  %v395_v41 = vadd.f32 %v1421_v19, %v359_v27  ;;  %vm1096_vm11 = vmpackc.low %vm532_vm10, %vm531_vm9  ;;  %v485_v42 = vadd.s32 %v1423_v20, %v452_v25  ;;  %v1128_v44 = vunpack.c.l.bf16 %v1263_v35 }
  0x25   : > { %1311 = vmatpush.bf16.msra.mxu2 %v1111_v40  ;;  %1312 = vmatpush.bf16.msra.mxu3 %v1111_v40  ;;  %v394_v40 = vadd.f32 %v1421_v19, %v358_v26  ;;  %v486_v43 = vadd.s32 %v1423_v20, %v453_v28  ;;  %v1129_v45 = vunpack.c.h.bf16 %v1263_v35  ;;  %vm509_vm12 = vcmp.lt.s32.totalorder %v1454_v48, 512 }
  0x26   : > { %vm510_vm13 = vcmp.lt.s32.totalorder %v478_v33, 512  ;;  %v1064_v46 = vpack.c.bf16 %v411_v32, %v410_v31  ;;  %v418_v47 = vmax.f32 %v386_v34, 0.0  ;;  %v493_v49 = vadd.s32 %v1423_v20, %v460_v36 }
  0x27   : > { %v494_v50 = vadd.s32 %v1423_v20, %v461_v37  ;;  %v419_v53 = vmax.f32 %v387_v39, 0.0  ;;  %v426_v54 = vmax.f32 %v394_v40, 0.0  ;;  %v1172_v56 = vunpack.c.l.bf16 %v1274_v52  ;;  %vm1525_vm2 = vmpackc.low %vm510_vm13, %vm509_vm12  ;;  %v1264_v37 = vld [vmem:[%s1397_s9 + $0x18] sm:$0xff]  }
  0x28   : > { %658 = vmatpush.bf16.msra.mxu0 %v1110_v55  ;;  %1313 = vmatpush.bf16.msra.mxu1 %v1110_v55  ;;  %vm517_vm14 = vcmp.lt.s32.totalorder %v485_v42, 512  ;;  %vm518_vm15 = vcmp.lt.s32.totalorder %v486_v43, 512  ;;  %v344_v57 = vmul.f32 %v1407_v9, %v1128_v44  ;;  %v345_v58 = vmul.f32 %v1407_v9, %v1129_v45 }
  0x29   : > { %1314 = vmatpush.bf16.msra.mxu2 %v1110_v55  ;;  %1315 = vmatpush.bf16.msra.mxu3 %v1110_v55  ;;  %v427_v55 = vmax.f32 %v395_v41, 0.0  ;;  %v1145_v61 = vunpack.c.h.bf16 %v1267_v51  ;;  %v1173_v62 = vunpack.c.h.bf16 %v1274_v52  ;;  %v366_v63 = vmul.f32 %v1407_v9, %v1172_v56  ;;  %vm1075_vm3 = vmpackc.low %vm518_vm15, %vm517_vm14  ;;  %v1275_v41 = vld [vmem:[%s1397_s9 + $0x70] sm:$0xff]   ;;  %v1272_v56 = vld [vmem:[%s1397_s9 + $0x58] sm:$0xff]  }
  0x2a   : > { %v446_v0 = vadd.s32 32, %v1411_v11  ;;  %v447_v1 = vadd.s32 40, %v1411_v11  ;;  %vm525_vm0 = vcmp.lt.s32.totalorder %v493_v49, 512  ;;  %vm526_vm1 = vcmp.lt.s32.totalorder %v494_v50, 512  ;;  %v1268_v50 = vld [vmem:[%s1397_s9 + $0x38] sm:$0xff]  }
  0x2b   : > { %1062 = vmatmul.msk.bf16.vlgmr.msra.gmra.mxu0 %vm1469_vm6, %v1061_v60  ;;  %1074 = vmatmul.msk.bf16.vlgmr.msra.gmra.mxu1 %vm1475_vm7, %v1073_v3  ;;  %v1144_v60 = vunpack.c.l.bf16 %v1267_v51  ;;  %v1076_v3 = vpack.c.bf16 %v419_v53, %v418_v47  ;;  %v1088_v4 = vpack.c.bf16 %v427_v55, %v426_v54  ;;  %v1160_v5 = vunpack.c.l.bf16 %v1271_v59  ;;  %vm1087_vm4 = vmpackc.low %vm526_vm1, %vm525_vm0 }
  0x2c   : > { %1086 = vmatmul.msk.bf16.vlgmr.msra.gmra.mxu2 %vm1084_vm8, %v1085_v8  ;;  %1098 = vmatmul.msk.bf16.vlgmr.msra.gmra.mxu3 %vm1096_vm11, %v1097_v38  ;;  %v1161_v6 = vunpack.c.h.bf16 %v1271_v59  ;;  %v367_v7 = vmul.f32 %v1407_v9, %v1173_v62  ;;  %v402_v8 = vadd.f32 %v1421_v19, %v366_v63  ;;  %v468_v10 = vadd.s32 208, %v1411_v11 }
  0x2d   : > { %v469_v48 = vadd.s32 216, %v1411_v11  ;;  %v380_v12 = vadd.f32 %v1421_v19, %v344_v57  ;;  %v381_v13 = vadd.f32 %v1421_v19, %v345_v58  ;;  %v352_v14 = vmul.f32 %v1407_v9, %v1144_v60 }
  0x2e   : > { %v353_v15 = vmul.f32 %v1407_v9, %v1145_v61  ;;  %v403_v16 = vadd.f32 %v1421_v19, %v367_v7  ;;  %v434_v17 = vmax.f32 %v402_v8, 0.0  ;;  %v501_v18 = vadd.s32 %v1423_v20, %v468_v10 }
  0x2f   : > { %v502_v21 = vadd.s32 %v1423_v20, %v469_v48  ;;  %v479_v22 = vadd.s32 %v1423_v20, %v446_v0  ;;  %v454_v23 = vadd.s32 96, %v1411_v11  ;;  %v455_v24 = vadd.s32 104, %v1411_v11 }
  0x30   : > { %v360_v25 = vmul.f32 %v1407_v9, %v1160_v5  ;;  %v361_v26 = vmul.f32 %v1407_v9, %v1161_v6  ;;  %v435_v27 = vmax.f32 %v403_v16, 0.0  ;;  %vm533_vm5 = vcmp.lt.s32.totalorder %v501_v18, 512 }
  0x31   : > { %vm534_vm6 = vcmp.lt.s32.totalorder %v502_v21, 512  ;;  %v480_v28 = vadd.s32 %v1423_v20, %v447_v1  ;;  %v388_v29 = vadd.f32 %v1421_v19, %v352_v14  ;;  %v389_v30 = vadd.f32 %v1421_v19, %v353_v15 }
  0x32   : > { %v462_v31 = vadd.s32 160, %v1411_v11  ;;  %vm1099_vm7 = vmpackc.low %vm534_vm6, %vm533_vm5  ;;  %v412_v32 = vmax.f32 %v380_v12, 0.0  ;;  %v413_v33 = vmax.f32 %v381_v13, 0.0  ;;  %v463_v34 = vadd.s32 168, %v1411_v11  ;;  %v1276_v12 = vld [vmem:[%s1397_s9 + $0x78] sm:$0xff]  }
  0x33   : > { %v1100_v35 = vpack.c.bf16 %v435_v27, %v434_v17  ;;  %v487_v36 = vadd.s32 %v1423_v20, %v454_v23  ;;  %vm511_vm8 = vcmp.lt.s32.totalorder %v479_v22, 512  ;;  %v488_v38 = vadd.s32 %v1423_v20, %v455_v24 }
  0x34   : > { %v396_v39 = vadd.f32 %v1421_v19, %v360_v25  ;;  %v397_v40 = vadd.f32 %v1421_v19, %v361_v26  ;;  %vm512_vm9 = vcmp.lt.s32.totalorder %v480_v28, 512  ;;  %v420_v42 = vmax.f32 %v388_v29, 0.0 }
  0x35   : > { %v421_v43 = vmax.f32 %v389_v30, 0.0  ;;  %v495_v44 = vadd.s32 %v1423_v20, %v462_v31  ;;  %v1067_v45 = vpack.c.bf16 %v413_v33, %v412_v32  ;;  %v1133_v47 = vunpack.c.h.bf16 %v1264_v37  ;;  %vm1572_vm14 = vmpackc.low %vm512_vm9, %vm511_vm8 }
  0x36   : > { %v496_v49 = vadd.s32 %v1423_v20, %v463_v34  ;;  %vm519_vm10 = vcmp.lt.s32.totalorder %v487_v36, 512  ;;  %v1176_v51 = vunpack.c.l.bf16 %v1275_v41  ;;  %v1177_v52 = vunpack.c.h.bf16 %v1275_v41 }
  0x37   : > { %v470_v53 = vadd.s32 224, %v1411_v11  ;;  %vm520_vm11 = vcmp.lt.s32.totalorder %v488_v38, 512  ;;  %v428_v54 = vmax.f32 %v396_v39, 0.0  ;;  %v429_v55 = vmax.f32 %v397_v40, 0.0 }
  0x38   : > { %v471_v57 = vadd.s32 232, %v1411_v11  ;;  %v1079_v58 = vpack.c.bf16 %v421_v43, %v420_v42  ;;  %vm527_vm12 = vcmp.lt.s32.totalorder %v495_v44, 512  ;;  %v368_v59 = vmul.f32 %v1407_v9, %v1176_v51  ;;  %vm1078_vm15 = vmpackc.low %vm520_vm11, %vm519_vm10 }
  0x39   : > { %v369_v60 = vmul.f32 %v1407_v9, %v1177_v52  ;;  %vm528_vm13 = vcmp.lt.s32.totalorder %v496_v49, 512  ;;  %v1148_v61 = vunpack.c.l.bf16 %v1268_v50  ;;  %v503_v62 = vadd.s32 %v1423_v20, %v470_v53 }
  0x3a   : > { %v504_v63 = vadd.s32 %v1423_v20, %v471_v57  ;;  %v1149_v1 = vunpack.c.h.bf16 %v1268_v50  ;;  %v1164_v2 = vunpack.c.l.bf16 %v1272_v56  ;;  %v1091_v5 = vpack.c.bf16 %v429_v55, %v428_v54  ;;  %vm1090_vm0 = vmpackc.low %vm528_vm13, %vm527_vm12 }
  0x3b   : > { %1065 = vmatmul.msk.bf16.gmra.mxu0 %vm1525_vm2, %v1064_v46  ;;  %1077 = vmatmul.msk.bf16.gmra.mxu1 %vm1075_vm3, %v1076_v3  ;;  %v1132_v46 = vunpack.c.l.bf16 %v1264_v37  ;;  %v404_v3 = vadd.f32 %v1421_v19, %v368_v59  ;;  %v1165_v6 = vunpack.c.h.bf16 %v1272_v56  ;;  %v347_v8 = vmul.f32 %v1407_v9, %v1133_v47 }
  0x3c   : > { %1089 = vmatmul.msk.bf16.gmra.mxu2 %vm1087_vm4, %v1088_v4  ;;  %1101 = vmatmul.msk.bf16.gmra.mxu3 %vm1099_vm7, %v1100_v35  ;;  %v405_v4 = vadd.f32 %v1421_v19, %v369_v60  ;;  %v448_v13 = vadd.s32 48, %v1411_v11  ;;  %vm535_vm1 = vcmp.lt.s32.totalorder %v503_v62, 512  ;;  %vm536_vm2 = vcmp.lt.s32.totalorder %v504_v63, 512 }
  0x3d   : > { %v346_v7 = vmul.f32 %v1407_v9, %v1132_v46  ;;  %v436_v10 = vmax.f32 %v404_v3, 0.0  ;;  %v449_v14 = vadd.s32 56, %v1411_v11  ;;  %v354_v15 = vmul.f32 %v1407_v9, %v1148_v61  ;;  %vm1102_vm3 = vmpackc.low %vm536_vm2, %vm535_vm1 }
  0x3e   : > { %v437_v48 = vmax.f32 %v405_v4, 0.0  ;;  %v355_v16 = vmul.f32 %v1407_v9, %v1149_v1  ;;  %v362_v17 = vmul.f32 %v1407_v9, %v1164_v2  ;;  %v363_v18 = vmul.f32 %v1407_v9, %v1165_v6 }
  0x3f   : > { %v1180_v22 = vunpack.c.l.bf16 %v1276_v12  ;;  %v1181_v23 = vunpack.c.h.bf16 %v1276_v12  ;;  %v382_v24 = vadd.f32 %v1421_v19, %v346_v7  ;;  %v383_v25 = vadd.f32 %v1421_v19, %v347_v8 }
  0x40   : > { %v1103_v21 = vpack.c.bf16 %v437_v48, %v436_v10  ;;  %v456_v26 = vadd.s32 112, %v1411_v11  ;;  %v457_v27 = vadd.s32 120, %v1411_v11  ;;  %v464_v28 = vadd.s32 176, %v1411_v11 }
  0x41   : > { %v465_v29 = vadd.s32 184, %v1411_v11  ;;  %v481_v30 = vadd.s32 %v1423_v20, %v448_v13  ;;  %v482_v31 = vadd.s32 %v1423_v20, %v449_v14  ;;  %v390_v32 = vadd.f32 %v1421_v19, %v354_v15 }
  0x42   : > { %v391_v33 = vadd.f32 %v1421_v19, %v355_v16  ;;  %v398_v34 = vadd.f32 %v1421_v19, %v362_v17  ;;  %v399_v35 = vadd.f32 %v1421_v19, %v363_v18  ;;  %v370_v36 = vmul.f32 %v1407_v9, %v1180_v22 }
  0x43   : > { %v371_v37 = vmul.f32 %v1407_v9, %v1181_v23  ;;  %v414_v38 = vmax.f32 %v382_v24, 0.0  ;;  %v415_v39 = vmax.f32 %v383_v25, 0.0  ;;  %v489_v40 = vadd.s32 %v1423_v20, %v456_v26 }
  0x44   : > { %v490_v41 = vadd.s32 %v1423_v20, %v457_v27  ;;  %v497_v42 = vadd.s32 %v1423_v20, %v464_v28  ;;  %v498_v43 = vadd.s32 %v1423_v20, %v465_v29  ;;  %v472_v44 = vadd.s32 240, %v1411_v11 }
  0x45   : > { %vm513_vm4 = vcmp.lt.s32.totalorder %v481_v30, 512  ;;  %vm514_vm5 = vcmp.lt.s32.totalorder %v482_v31, 512  ;;  %v422_v46 = vmax.f32 %v390_v32, 0.0  ;;  %v423_v47 = vmax.f32 %v391_v33, 0.0 }
  0x46   : > { %v430_v49 = vmax.f32 %v398_v34, 0.0  ;;  %v431_v9 = vmax.f32 %v399_v35, 0.0  ;;  %v406_v50 = vadd.f32 %v1421_v19, %v370_v36  ;;  %v407_v51 = vadd.f32 %v1421_v19, %v371_v37  ;;  %vm1069_vm10 = vmpackc.low %vm514_vm5, %vm513_vm4 }
  0x47   : > { %vm521_vm6 = vcmp.lt.s32.totalorder %v489_v40, 512  ;;  %vm522_vm7 = vcmp.lt.s32.totalorder %v490_v41, 512  ;;  %vm529_vm8 = vcmp.lt.s32.totalorder %v497_v42, 512  ;;  %vm530_vm9 = vcmp.lt.s32.totalorder %v498_v43, 512 }
  0x48   : > { %v505_v52 = vadd.s32 %v1423_v20, %v472_v44  ;;  %v1082_v54 = vpack.c.bf16 %v423_v47, %v422_v46  ;;  %vm1081_vm11 = vmpackc.low %vm522_vm7, %vm521_vm6  ;;  %v1094_v55 = vpack.c.bf16 %v431_v9, %v430_v49  ;;  %v438_v56 = vmax.f32 %v406_v50, 0.0 }
  0x49   : > { %v439_v57 = vmax.f32 %v407_v51, 0.0  ;;  %vm1093_vm12 = vmpackc.low %vm530_vm9, %vm529_vm8 }
  0x4a   : > { %vm537_vm13 = vcmp.lt.s32.totalorder %v505_v52, 512 }
  0x4b   : > { %1068 = vmatmul.msk.bf16.gmra.mxu0 %vm1572_vm14, %v1067_v45  ;;  %1080 = vmatmul.msk.bf16.gmra.mxu1 %vm1078_vm15, %v1079_v58  ;;  %v473_v45 = vadd.s32 248, %v1411_v11  ;;  %v1070_v11 = vpack.c.bf16 %v415_v39, %v414_v38  ;;  %v1106_v19 = vpack.c.bf16 %v439_v57, %v438_v56 }
  0x4c   : > { %1092 = vmatmul.msk.bf16.gmra.mxu2 %vm1090_vm0, %v1091_v5  ;;  %1104 = vmatmul.msk.bf16.gmra.mxu3 %vm1102_vm3, %v1103_v21 }
  0x4d   : > { %v506_v53 = vadd.s32 %v1423_v20, %v473_v45 }
  0x4f   : > { %vm538_vm14 = vcmp.lt.s32.totalorder %v506_v53, 512 }
  0x50   : > { %vm1105_vm15 = vmpackc.low %vm538_vm14, %vm537_vm13 }
  0x5b   : > { %1071 = vmatmul.msk.bf16.gmra.mxu0 %vm1069_vm10, %v1070_v11  ;;  %1083 = vmatmul.msk.bf16.gmra.mxu1 %vm1081_vm11, %v1082_v54 }
  0x5c   : > { %1095 = vmatmul.msk.bf16.gmra.mxu2 %vm1093_vm12, %v1094_v55  ;;  %1107 = vmatmul.msk.bf16.gmra.mxu3 %vm1105_vm15, %v1106_v19 }
  0xa8   : > { %v660_v58 = vpop.f32.mrf.mxu0  ;;  %v1618_v59 = vpop.f32.mrf.mxu1 }
  0xa9   : > { %v842_v29 = vmul.f32 %v660_v58, %v660_v58 }
  0xaf   : > { %v1620_v20 = vpop.f32.mrf.mxu2  ;;  %v1634_v0 = vpop.f32.mrf.mxu3 }
  0xb0   : > { %v662_v60 = vpop.f32.mrf.mxu0  ;;  %v1629_v61 = vpop.f32.mrf.mxu1 }
  0xb1   : > { %v1185_v62 = vpack.c.bf16 %v662_v60, %v660_v58  ;;  %v1205_v63 = vpack.c.bf16 %v1629_v61, %v1618_v59  ;;  %v843_v27 = vmul.f32 %v662_v60, %v662_v60  ;;  %v804_v31 = vadd.f32 %v662_v60, %v660_v58 }
  0xb2   : > { %v850_v58 = vmul.f32 %v1618_v59, %v1618_v59 }
  0xb3   : > { %1186 = vst [vmem:[%s1627_s7] sm:$0xff] %v1185_v62   ;;  %v874_v32 = vadd.f32 %v843_v27, %v842_v29 }
  0xb4   : > { %1280 = vst [vmem:[%s1627_s7 + $0x20] sm:$0xff] %v1205_v63  }
  0xb7   : > { %v1637_v1 = vpop.f32.mrf.mxu2  ;;  %v1644_v5 = vpop.f32.mrf.mxu3 }
  0xb8   : > { %v665_v2 = vpop.f32.mrf.mxu0  ;;  %v1639_v3 = vpop.f32.mrf.mxu1  ;;  %v1225_v4 = vpack.c.bf16 %v1637_v1, %v1620_v20  ;;  %v1245_v6 = vpack.c.bf16 %v1644_v5, %v1634_v0 }
  0xb9   : > { %v844_v30 = vmul.f32 %v665_v2, %v665_v2  ;;  %v805_v34 = vadd.f32 %v804_v31, %v665_v2 }
  0xba   : > { %1284 = vst [vmem:[%s1627_s7 + $0x40] sm:$0xff] %v1225_v4  }
  0xbb   : > { %1288 = vst [vmem:[%s1627_s7 + $0x60] sm:$0xff] %v1245_v6   ;;  %v875_v36 = vadd.f32 %v874_v32, %v844_v30 }
  0xbf   : > { %v1649_v7 = vpop.f32.mrf.mxu2  ;;  %v1656_v13 = vpop.f32.mrf.mxu3 }
  0xc0   : > { %v667_v8 = vpop.f32.mrf.mxu0  ;;  %v1651_v10 = vpop.f32.mrf.mxu1 }
  0xc1   : > { %v1190_v48 = vpack.c.bf16 %v667_v8, %v665_v2  ;;  %v1210_v12 = vpack.c.bf16 %v1651_v10, %v1639_v3  ;;  %v845_v33 = vmul.f32 %v667_v8, %v667_v8  ;;  %v806_v41 = vadd.f32 %v805_v34, %v667_v8 }
  0xc2   : > { %v851_v2 = vmul.f32 %v1629_v61, %v1629_v61  ;;  %v852_v8 = vmul.f32 %v1639_v3, %v1639_v3 }
  0xc3   : > { %1277 = vst [vmem:[%s1627_s7 + $0x8] sm:$0xff] %v1190_v48   ;;  %v876_v42 = vadd.f32 %v875_v36, %v845_v33 }
  0xc4   : > { %1281 = vst [vmem:[%s1627_s7 + $0x28] sm:$0xff] %v1210_v12  }
  0xc7   : > { %v1659_v14 = vpop.f32.mrf.mxu2  ;;  %v1666_v18 = vpop.f32.mrf.mxu3 }
  0xc8   : > { %v670_v15 = vpop.f32.mrf.mxu0  ;;  %v1661_v16 = vpop.f32.mrf.mxu1  ;;  %v1230_v17 = vpack.c.bf16 %v1659_v14, %v1649_v7  ;;  %v1250_v21 = vpack.c.bf16 %v1666_v18, %v1656_v13 }
  0xc9   : > { %v846_v37 = vmul.f32 %v670_v15, %v670_v15  ;;  %v807_v44 = vadd.f32 %v806_v41, %v670_v15  ;;  %v859_v41 = vmul.f32 %v1637_v1, %v1637_v1 }
  0xca   : > { %1285 = vst [vmem:[%s1627_s7 + $0x48] sm:$0xff] %v1230_v17  }
  0xcb   : > { %1289 = vst [vmem:[%s1627_s7 + $0x68] sm:$0xff] %v1250_v21   ;;  %v877_v46 = vadd.f32 %v876_v42, %v846_v37 }
  0xcf   : > { %v1671_v22 = vpop.f32.mrf.mxu2  ;;  %v1678_v28 = vpop.f32.mrf.mxu3 }
  0xd0   : > { %v672_v23 = vpop.f32.mrf.mxu0  ;;  %v1673_v24 = vpop.f32.mrf.mxu1 }
  0xd1   : > { %v1195_v25 = vpack.c.bf16 %v672_v23, %v670_v15  ;;  %v1215_v26 = vpack.c.bf16 %v1673_v24, %v1661_v16  ;;  %v847_v43 = vmul.f32 %v672_v23, %v672_v23  ;;  %v808_v9 = vadd.f32 %v807_v44, %v672_v23 }
  0xd2   : > { %v855_v29 = vmul.f32 %v1673_v24, %v1673_v24 }
  0xd3   : > { %1278 = vst [vmem:[%s1627_s7 + $0x10] sm:$0xff] %v1195_v25   ;;  %v878_v50 = vadd.f32 %v877_v46, %v847_v43  ;;  %v860_v43 = vmul.f32 %v1649_v7, %v1649_v7  ;;  %v861_v46 = vmul.f32 %v1659_v14, %v1659_v14 }
  0xd4   : > { %1282 = vst [vmem:[%s1627_s7 + $0x30] sm:$0xff] %v1215_v26  }
  0xd7   : > { %v1681_v35 = vpop.f32.mrf.mxu2  ;;  %v1686_v45 = vpop.f32.mrf.mxu3 }
  0xd8   : > { %v675_v38 = vpop.f32.mrf.mxu0  ;;  %v695_v39 = vpop.f32.mrf.mxu1  ;;  %v1235_v40 = vpack.c.bf16 %v1681_v35, %v1671_v22  ;;  %v1255_v49 = vpack.c.bf16 %v1686_v45, %v1678_v28 }
  0xd9   : > { %v848_v47 = vmul.f32 %v675_v38, %v675_v38  ;;  %v809_v51 = vadd.f32 %v808_v9, %v675_v38  ;;  %v856_v33 = vmul.f32 %v695_v39, %v695_v39 }
  0xda   : > { %1286 = vst [vmem:[%s1627_s7 + $0x50] sm:$0xff] %v1235_v40  }
  0xdb   : > { %1290 = vst [vmem:[%s1627_s7 + $0x70] sm:$0xff] %v1255_v49   ;;  %v879_v53 = vadd.f32 %v878_v50, %v848_v47 }
  0xdf   : > { %v715_v52 = vpop.f32.mrf.mxu2  ;;  %v1695_v63 = vpop.f32.mrf.mxu3 }
  0xe0   : > { %v677_v11 = vpop.f32.mrf.mxu0  ;;  %v697_v54 = vpop.f32.mrf.mxu1 }
  0xe1   : > { %v1200_v55 = vpack.c.bf16 %v677_v11, %v675_v38  ;;  %v810_v56 = vadd.f32 %v809_v51, %v677_v11  ;;  %v849_v57 = vmul.f32 %v677_v11, %v677_v11  ;;  %v1220_v19 = vpack.c.bf16 %v697_v54, %v695_v39 }
  0xe2   : > { %v857_v37 = vmul.f32 %v697_v54, %v697_v54  ;;  %v863_v51 = vmul.f32 %v1681_v35, %v1681_v35 }
  0xe3   : > { %1279 = vst [vmem:[%s1627_s7 + $0x18] sm:$0xff] %v1200_v55   ;;  %v811_v60 = vadd.f32 %v810_v56, %v1618_v59  ;;  %v880_v62 = vadd.f32 %v879_v53, %v849_v57  ;;  %v853_v59 = vmul.f32 %v1651_v10, %v1651_v10 }
  0xe4   : > { %1283 = vst [vmem:[%s1627_s7 + $0x38] sm:$0xff] %v1220_v19  }
  0xe5   : > { %v812_v4 = vadd.f32 %v811_v60, %v1629_v61  ;;  %v881_v6 = vadd.f32 %v880_v62, %v850_v58  ;;  %v854_v61 = vmul.f32 %v1661_v16, %v1661_v16 }
  0xe7   : > { %v813_v48 = vadd.f32 %v812_v4, %v1639_v3  ;;  %v882_v12 = vadd.f32 %v881_v6, %v851_v2  ;;  %v717_v15 = vpop.f32.mrf.mxu2  ;;  %v737_v27 = vpop.f32.mrf.mxu3  ;;  %v869_v4 = vmul.f32 %v1666_v18, %v1666_v18 }
  0xe8   : > { %v1240_v17 = vpack.c.bf16 %v717_v15, %v715_v52  ;;  %v1260_v3 = vpack.c.bf16 %v737_v27, %v1695_v63  ;;  %v865_v57 = vmul.f32 %v717_v15, %v717_v15 }
  0xe9   : > { %v883_v21 = vadd.f32 %v882_v12, %v852_v8  ;;  %v814_v23 = vadd.f32 %v813_v48, %v1651_v10  ;;  %v870_v8 = vmul.f32 %v1678_v28, %v1678_v28 }
  0xea   : > { %1287 = vst [vmem:[%s1627_s7 + $0x58] sm:$0xff] %v1240_v17  }
  0xeb   : > { %v815_v25 = vadd.f32 %v814_v23, %v1661_v16  ;;  %v884_v26 = vadd.f32 %v883_v21, %v853_v59  ;;  %1291 = vst [vmem:[%s1627_s7 + $0x78] sm:$0xff] %v1260_v3   ;;  %v858_v16 = vmul.f32 %v1620_v20, %v1620_v20  ;;  %v872_v21 = vmul.f32 %v1695_v63, %v1695_v63 }
  0xed   : > { %v816_v30 = vadd.f32 %v815_v25, %v1673_v24  ;;  %v885_v31 = vadd.f32 %v884_v26, %v854_v61  ;;  %v873_v61 = vmul.f32 %v737_v27, %v737_v27 }
  0xef   : > { %v817_v32 = vadd.f32 %v816_v30, %v695_v39  ;;  %v886_v10 = vadd.f32 %v885_v31, %v855_v29 }
  0xf1   : > { %v887_v34 = vadd.f32 %v886_v10, %v856_v33  ;;  %v818_v36 = vadd.f32 %v817_v32, %v697_v54  ;;  %v864_v54 = vmul.f32 %v715_v52, %v715_v52 }
  0xf3   : > { %v819_v38 = vadd.f32 %v818_v36, %v1620_v20  ;;  %v888_v40 = vadd.f32 %v887_v34, %v857_v37  ;;  %v862_v20 = vmul.f32 %v1671_v22, %v1671_v22 }
  0xf5   : > { %v820_v42 = vadd.f32 %v819_v38, %v1637_v1  ;;  %v889_v24 = vadd.f32 %v888_v40, %v858_v16 }
  0xf7   : > { %v821_v39 = vadd.f32 %v820_v42, %v1649_v7  ;;  %v890_v44 = vadd.f32 %v889_v24, %v859_v41 }
  0xf9   : > { %v891_v47 = vadd.f32 %v890_v44, %v860_v43  ;;  %v822_v49 = vadd.f32 %v821_v39, %v1659_v14  ;;  %v866_v14 = vmul.f32 %v1634_v0, %v1634_v0 }
  0xfb   : > { %v823_v9 = vadd.f32 %v822_v49, %v1671_v22  ;;  %v892_v50 = vadd.f32 %v891_v47, %v861_v46  ;;  %v867_v22 = vmul.f32 %v1644_v5, %v1644_v5 }
  0xfd   : > { %v824_v1 = vadd.f32 %v823_v9, %v1681_v35  ;;  %v893_v53 = vadd.f32 %v892_v50, %v862_v20  ;;  %v868_v35 = vmul.f32 %v1656_v13, %v1656_v13 }
  0xff   : > { %v894_v7 = vadd.f32 %v893_v53, %v863_v51  ;;  %v825_v11 = vadd.f32 %v824_v1, %v715_v52 }
 0x101   : > { %v895_v55 = vadd.f32 %v894_v7, %v864_v54  ;;  %v826_v56 = vadd.f32 %v825_v11, %v717_v15 }
 0x103   : > { %v827_v19 = vadd.f32 %v826_v56, %v1634_v0  ;;  %v896_v58 = vadd.f32 %v895_v55, %v865_v57 }
 0x105   : > { %v828_v60 = vadd.f32 %v827_v19, %v1644_v5  ;;  %v897_v62 = vadd.f32 %v896_v58, %v866_v14 }
 0x107   : > { %v829_v52 = vadd.f32 %v828_v60, %v1656_v13  ;;  %v898_v2 = vadd.f32 %v897_v62, %v867_v22  ;;  %v871_v13 = vmul.f32 %v1686_v45, %v1686_v45 }
 0x109   : > { %v899_v6 = vadd.f32 %v898_v2, %v868_v35  ;;  %v830_v0 = vadd.f32 %v829_v52, %v1666_v18 }
 0x10b   : > { %v831_v48 = vadd.f32 %v830_v0, %v1678_v28  ;;  %v900_v5 = vadd.f32 %v899_v6, %v869_v4 }
 0x10d   : > { %v832_v12 = vadd.f32 %v831_v48, %v1686_v45  ;;  %v901_v15 = vadd.f32 %v900_v5, %v870_v8 }
 0x10f   : > { %v902_v17 = vadd.f32 %v901_v15, %v871_v13  ;;  %v833_v59 = vadd.f32 %v832_v12, %v1695_v63 }
 0x111   : > { %v903_v18 = vadd.f32 %v902_v17, %v872_v21  ;;  %v834_v23 = vadd.f32 %v833_v59, %v737_v27 }
 0x113   : > { %v835_v25 = vrot.slane %v834_v23, 4  ;;  %v904_v26 = vadd.f32 %v903_v18, %v873_v61 }
 0x115   : > { %v836_v28 = vadd.f32 %v835_v25, %v834_v23  ;;  %v905_v3 = vrot.slane %v904_v26, 4 }
 0x117   : > { %v837_v29 = vrot.slane %v836_v28, 2  ;;  %v906_v30 = vadd.f32 %v905_v3, %v904_v26 }
 0x119   : > { %v838_v31 = vadd.f32 %v837_v29, %v836_v28  ;;  %v907_v45 = vrot.slane %v906_v30, 2 }
 0x11b   : > { %v839_v32 = vrot.slane %v838_v31, 1  ;;  %v908_v33 = vadd.f32 %v907_v45, %v906_v30 }
 0x11d   : > { %v840_v63 = vadd.f32 %v839_v32, %v838_v31  ;;  %v909_v10 = vrot.slane %v908_v33, 1 }
 0x11f   : > { %841 = vst [vmem:[%s268_s8] sm:$0x1] %v840_v63  ;;  %v910_v27 = vadd.f32 %v909_v10, %v908_v33 }
 0x121   : > { %911 = vst [vmem:[%s271_s11] sm:$0x1] %v910_v27 }
 0x122 PF: > { %s17_s21 = sadd.s32 1, %s1332_s21  }
 0x123   : > { %p14_p5 = scmp.ge.s32.totalorder %s17_s21, 4  }
 0x125   :  { %16 = sbr.rel (!%p14_p5) target bundleno = 1 (0x1), region = 90 }

// kernel: _lambda_.5
= control target key start
LH: loop header
LB: loop body
LE: loop exit
PB: predicated region body
PF: predicated region fallthrough
CT: control target
= control target key end

     0   :  { %s685_s9 = smov 0   ;;  %s782_s0 = inlined_call_operand.vmem [shape: bf16[512,128], index: 0, kind: input, shape index: {}]   ;;  %s783_s1 = inlined_call_operand.vmem [shape: bf16[128,128], index: 1, kind: input, shape index: {}]   ;;  %s784_s2 = inlined_call_operand.vmem [shape: f32[512,128], index: 2, kind: output, shape index: {}]  }
   0x1 LB: > { %s500_s10 = sadd.s32 4294967295, %s668_s9   ;;  %p504_p0 = scmp.ge.s32.totalorder %s668_s9, 1  ;;  %s668_s9 = sphi %s685_s9, %s12_s9  }
   0x2   : > { %p113_p1 = scmp.lt.s32.totalorder %s668_s9, 3 }
   0x4   : > { %p114_p2 = pnand %p504_p0, %p113_p1 }
   0x5   : > { %s505_s13 = sshll.u32 (!%p114_p2), %s500_s10, 5 }
   0x6   : > { %117 = sbr.rel (%p114_p2) target bundleno = 234 (0xea), region = 28  ;;  %p136_p3 = scmp.lt.s32.totalorder (!%p114_p2), %s505_s13, 63 }
   0xb   : > { %v550_v0 = vld [vmem:[%s783_s1 + $0x38] sm:$0xff]  ;;  %v549_v1 = vld [vmem:[%s783_s1 + $0x30] sm:$0xff]  ;;  %v548_v2 = vld [vmem:[%s783_s1 + $0x28] sm:$0xff]  ;;  %s786_s13 = smov (!%p136_p3, %s505_s13), 63 }
   0xc   : > { %323 = vmatpush.bf16.msra.mxu0 %v550_v0  ;;  %630 = vmatpush.bf16.msra.mxu1 %v550_v0  ;;  %v547_v3 = vld [vmem:[%s783_s1 + $0x20] sm:$0xff]  ;;  %s506_s20 = sshll.u32 %s786_s13, 2  ;;  %v546_v4 = vld [vmem:[%s783_s1 + $0x18] sm:$0xff]  ;;  %v545_v5 = vld [vmem:[%s783_s1 + $0x10] sm:$0xff]  ;;  %s508_s4 = sshll.u32 %s786_s13, 3 }
   0xd   : > { %631 = vmatpush.bf16.msra.mxu2 %v550_v0  ;;  %632 = vmatpush.bf16.msra.mxu3 %v550_v0  ;;  %s714_s25 = scalar_lea.vmem %s782_s0, %s506_s20  ;;  %v544_v14 = vld [vmem:[%s783_s1 + $0x8] sm:$0xff]  ;;  %v543_v23 = vld [vmem:[%s783_s1] sm:$0xff]  ;;  %s745_s7 = scalar_lea.vmem %s784_s2, %s508_s4 }
   0xe   : > { %v552_v6 = vld [vmem:[%s714_s25] sm:$0xff]   ;;  %v615_v32 = vld [vmem:[%s714_s25 + $0x8] sm:$0xff]   ;;  %v616_v56 = vld [vmem:[%s714_s25 + $0x10] sm:$0xff]  }
   0xf   : > { %v618_v7 = vld [vmem:[%s714_s25 + $0x20] sm:$0xff]   ;;  %v553_v10 = vunpack.c.l.bf16 %v552_v6  ;;  %v554_v11 = vunpack.c.h.bf16 %v552_v6  ;;  %v619_v33 = vld [vmem:[%s714_s25 + $0x28] sm:$0xff]   ;;  %v557_v36 = vunpack.c.l.bf16 %v615_v32  ;;  %v558_v37 = vunpack.c.h.bf16 %v615_v32  ;;  %v620_v57 = vld [vmem:[%s714_s25 + $0x30] sm:$0xff]  }
  0x10   : > { %324 = vmatpush.bf16.msra.mxu0 %v549_v1  ;;  %633 = vmatpush.bf16.msra.mxu1 %v549_v1  ;;  %v622_v8 = vld [vmem:[%s714_s25 + $0x40] sm:$0xff]   ;;  %v569_v12 = vunpack.c.l.bf16 %v618_v7  ;;  %v570_v13 = vunpack.c.h.bf16 %v618_v7  ;;  %v623_v34 = vld [vmem:[%s714_s25 + $0x48] sm:$0xff]   ;;  %v573_v38 = vunpack.c.l.bf16 %v619_v33  ;;  %v574_v39 = vunpack.c.h.bf16 %v619_v33  ;;  %v624_v58 = vld [vmem:[%s714_s25 + $0x50] sm:$0xff]  }
  0x11   : > { %634 = vmatpush.bf16.msra.mxu2 %v549_v1  ;;  %635 = vmatpush.bf16.msra.mxu3 %v549_v1  ;;  %v626_v9 = vld [vmem:[%s714_s25 + $0x60] sm:$0xff]   ;;  %v585_v15 = vunpack.c.l.bf16 %v622_v8  ;;  %v586_v16 = vunpack.c.h.bf16 %v622_v8  ;;  %v211_v19 = vmax.f32 %v553_v10, 0.0  ;;  %v212_v20 = vmax.f32 %v554_v11, 0.0  ;;  %v627_v35 = vld [vmem:[%s714_s25 + $0x68] sm:$0xff]   ;;  %v628_v59 = vld [vmem:[%s714_s25 + $0x70] sm:$0xff]  }
  0x12   : > { %v601_v17 = vunpack.c.l.bf16 %v626_v9  ;;  %v602_v18 = vunpack.c.h.bf16 %v626_v9  ;;  %v219_v21 = vmax.f32 %v569_v12, 0.0  ;;  %v220_v22 = vmax.f32 %v570_v13, 0.0 }
  0x13   : > { %v227_v24 = vmax.f32 %v585_v15, 0.0  ;;  %v228_v25 = vmax.f32 %v586_v16, 0.0  ;;  %v243_v28 = vpack.c.bf16 %v212_v20, %v211_v19  ;;  %v589_v40 = vunpack.c.l.bf16 %v623_v34  ;;  %v617_v16 = vld [vmem:[%s714_s25 + $0x18] sm:$0xff]  }
  0x14   : > { %325 = vmatpush.bf16.msra.mxu0 %v548_v2  ;;  %636 = vmatpush.bf16.msra.mxu1 %v548_v2  ;;  %v235_v26 = vmax.f32 %v601_v17, 0.0  ;;  %v236_v27 = vmax.f32 %v602_v18, 0.0  ;;  %v247_v29 = vpack.c.bf16 %v220_v22, %v219_v21  ;;  %v590_v41 = vunpack.c.h.bf16 %v623_v34  ;;  %v621_v17 = vld [vmem:[%s714_s25 + $0x38] sm:$0xff]  }
  0x15   : > { %637 = vmatpush.bf16.msra.mxu2 %v548_v2  ;;  %638 = vmatpush.bf16.msra.mxu3 %v548_v2  ;;  %v251_v30 = vpack.c.bf16 %v228_v25, %v227_v24  ;;  %v605_v42 = vunpack.c.l.bf16 %v627_v35  ;;  %v606_v43 = vunpack.c.h.bf16 %v627_v35  ;;  %v213_v44 = vmax.f32 %v557_v36, 0.0  ;;  %v625_v18 = vld [vmem:[%s714_s25 + $0x58] sm:$0xff]  }
  0x16   : > { %v255_v31 = vpack.c.bf16 %v236_v27, %v235_v26  ;;  %v214_v45 = vmax.f32 %v558_v37, 0.0  ;;  %v221_v46 = vmax.f32 %v573_v38, 0.0  ;;  %v222_v47 = vmax.f32 %v574_v39, 0.0  ;;  %v629_v19 = vld [vmem:[%s714_s25 + $0x78] sm:$0xff]  }
  0x17   : > { %v229_v48 = vmax.f32 %v589_v40, 0.0  ;;  %v230_v49 = vmax.f32 %v590_v41, 0.0  ;;  %v237_v50 = vmax.f32 %v605_v42, 0.0  ;;  %v238_v51 = vmax.f32 %v606_v43, 0.0 }
  0x18   : > { %326 = vmatpush.bf16.msra.mxu0 %v547_v3  ;;  %639 = vmatpush.bf16.msra.mxu1 %v547_v3  ;;  %v244_v52 = vpack.c.bf16 %v214_v45, %v213_v44  ;;  %v248_v53 = vpack.c.bf16 %v222_v47, %v221_v46  ;;  %v561_v60 = vunpack.c.l.bf16 %v616_v56  ;;  %v562_v61 = vunpack.c.h.bf16 %v616_v56 }
  0x19   : > { %640 = vmatpush.bf16.msra.mxu2 %v547_v3  ;;  %641 = vmatpush.bf16.msra.mxu3 %v547_v3  ;;  %v252_v54 = vpack.c.bf16 %v230_v49, %v229_v48  ;;  %v256_v55 = vpack.c.bf16 %v238_v51, %v237_v50  ;;  %v577_v62 = vunpack.c.l.bf16 %v620_v57  ;;  %v578_v63 = vunpack.c.h.bf16 %v620_v57 }
  0x1a   : > { %v593_v0 = vunpack.c.l.bf16 %v624_v58  ;;  %v594_v1 = vunpack.c.h.bf16 %v624_v58  ;;  %v609_v2 = vunpack.c.l.bf16 %v628_v59  ;;  %v610_v3 = vunpack.c.h.bf16 %v628_v59 }
  0x1b   : > { %v223_v6 = vmax.f32 %v577_v62, 0.0  ;;  %v224_v7 = vmax.f32 %v578_v63, 0.0  ;;  %v565_v20 = vunpack.c.l.bf16 %v617_v16  ;;  %v566_v21 = vunpack.c.h.bf16 %v617_v16 }
  0x1c   : > { %327 = vmatpush.bf16.msra.mxu0 %v546_v4  ;;  %642 = vmatpush.bf16.msra.mxu1 %v546_v4  ;;  %v231_v8 = vmax.f32 %v593_v0, 0.0  ;;  %v232_v9 = vmax.f32 %v594_v1, 0.0  ;;  %v239_v10 = vmax.f32 %v609_v2, 0.0  ;;  %v240_v11 = vmax.f32 %v610_v3, 0.0 }
  0x1d   : > { %643 = vmatpush.bf16.msra.mxu2 %v546_v4  ;;  %644 = vmatpush.bf16.msra.mxu3 %v546_v4  ;;  %v215_v4 = vmax.f32 %v561_v60, 0.0  ;;  %v249_v13 = vpack.c.bf16 %v224_v7, %v223_v6  ;;  %v581_v22 = vunpack.c.l.bf16 %v621_v17  ;;  %v597_v24 = vunpack.c.l.bf16 %v625_v18 }
  0x1e   : > { %v257_v15 = vpack.c.bf16 %v240_v11, %v239_v10  ;;  %v598_v25 = vunpack.c.h.bf16 %v625_v18  ;;  %v613_v26 = vunpack.c.l.bf16 %v629_v19  ;;  %v614_v27 = vunpack.c.h.bf16 %v629_v19 }
  0x1f   : > { %v233_v32 = vmax.f32 %v597_v24, 0.0 }
  0x20   : > { %328 = vmatpush.bf16.msra.mxu0 %v545_v5  ;;  %645 = vmatpush.bf16.msra.mxu1 %v545_v5  ;;  %v234_v33 = vmax.f32 %v598_v25, 0.0  ;;  %v241_v34 = vmax.f32 %v613_v26, 0.0  ;;  %v242_v35 = vmax.f32 %v614_v27, 0.0 }
  0x21   : > { %646 = vmatpush.bf16.msra.mxu2 %v545_v5  ;;  %647 = vmatpush.bf16.msra.mxu3 %v545_v5  ;;  %v216_v5 = vmax.f32 %v562_v61, 0.0 }
  0x22   : > { %v254_v38 = vpack.c.bf16 %v234_v33, %v233_v32  ;;  %v258_v39 = vpack.c.bf16 %v242_v35, %v241_v34 }
  0x23   : > { %v245_v12 = vpack.c.bf16 %v216_v5, %v215_v4 }
  0x24   : > { %329 = vmatpush.bf16.msra.mxu0 %v544_v14  ;;  %648 = vmatpush.bf16.msra.mxu1 %v544_v14 }
  0x25   : > { %649 = vmatpush.bf16.msra.mxu2 %v544_v14  ;;  %650 = vmatpush.bf16.msra.mxu3 %v544_v14  ;;  %v253_v14 = vpack.c.bf16 %v232_v9, %v231_v8 }
  0x28   : > { %330 = vmatpush.bf16.msra.mxu0 %v543_v23  ;;  %651 = vmatpush.bf16.msra.mxu1 %v543_v23 }
  0x29   : > { %652 = vmatpush.bf16.msra.mxu2 %v543_v23  ;;  %653 = vmatpush.bf16.msra.mxu3 %v543_v23  ;;  %v582_v23 = vunpack.c.h.bf16 %v621_v17 }
  0x2b   : > { %331 = vmatmul.bf16.vlgmr.msra.gmra.mxu0 %v243_v28  ;;  %351 = vmatmul.bf16.vlgmr.msra.gmra.mxu1 %v247_v29  ;;  %v217_v28 = vmax.f32 %v565_v20, 0.0  ;;  %v218_v29 = vmax.f32 %v566_v21, 0.0 }
  0x2c   : > { %371 = vmatmul.bf16.vlgmr.msra.gmra.mxu2 %v251_v30  ;;  %391 = vmatmul.bf16.vlgmr.msra.gmra.mxu3 %v255_v31  ;;  %v225_v30 = vmax.f32 %v581_v22, 0.0  ;;  %v226_v31 = vmax.f32 %v582_v23, 0.0 }
  0x2d   : > { %v246_v36 = vpack.c.bf16 %v218_v29, %v217_v28 }
  0x2e   : > { %v250_v37 = vpack.c.bf16 %v226_v31, %v225_v30 }
  0x3b   : > { %336 = vmatmul.bf16.gmra.mxu0 %v244_v52  ;;  %356 = vmatmul.bf16.gmra.mxu1 %v248_v53 }
  0x3c   : > { %376 = vmatmul.bf16.gmra.mxu2 %v252_v54  ;;  %396 = vmatmul.bf16.gmra.mxu3 %v256_v55 }
  0x4b   : > { %341 = vmatmul.bf16.gmra.mxu0 %v245_v12  ;;  %361 = vmatmul.bf16.gmra.mxu1 %v249_v13 }
  0x4c   : > { %381 = vmatmul.bf16.gmra.mxu2 %v253_v14  ;;  %401 = vmatmul.bf16.gmra.mxu3 %v257_v15 }
  0x5b   : > { %346 = vmatmul.bf16.gmra.mxu0 %v246_v36  ;;  %366 = vmatmul.bf16.gmra.mxu1 %v250_v37 }
  0x5c   : > { %386 = vmatmul.bf16.gmra.mxu2 %v254_v38  ;;  %406 = vmatmul.bf16.gmra.mxu3 %v258_v39 }
  0xa8   : > { %v332_v40 = vpop.f32.mrf.mxu0  ;;  %v352_v41 = vpop.f32.mrf.mxu1 }
  0xa9   : > { %412 = vst [vmem:[%s745_s7] sm:$0xff] %v332_v40 }
  0xaa   : > { %420 = vst [vmem:[%s745_s7 + $0x40] sm:$0xff] %v352_v41 }
  0xaf   : > { %v372_v42 = vpop.f32.mrf.mxu2  ;;  %v392_v43 = vpop.f32.mrf.mxu3 }
  0xb0   : > { %428 = vst [vmem:[%s745_s7 + $0x80] sm:$0xff] %v372_v42  ;;  %v334_v44 = vpop.f32.mrf.mxu0  ;;  %v354_v45 = vpop.f32.mrf.mxu1 }
  0xb1   : > { %436 = vst [vmem:[%s745_s7 + $0xc0] sm:$0xff] %v392_v43 }
  0xb2   : > { %413 = vst [vmem:[%s745_s7 + $0x8] sm:$0xff] %v334_v44 }
  0xb3   : > { %421 = vst [vmem:[%s745_s7 + $0x48] sm:$0xff] %v354_v45 }
  0xb7   : > { %v374_v46 = vpop.f32.mrf.mxu2  ;;  %v394_v47 = vpop.f32.mrf.mxu3 }
  0xb8   : > { %429 = vst [vmem:[%s745_s7 + $0x88] sm:$0xff] %v374_v46  ;;  %v337_v48 = vpop.f32.mrf.mxu0  ;;  %v357_v49 = vpop.f32.mrf.mxu1 }
  0xb9   : > { %437 = vst [vmem:[%s745_s7 + $0xc8] sm:$0xff] %v394_v47 }
  0xba   : > { %414 = vst [vmem:[%s745_s7 + $0x10] sm:$0xff] %v337_v48 }
  0xbb   : > { %422 = vst [vmem:[%s745_s7 + $0x50] sm:$0xff] %v357_v49 }
  0xbf   : > { %v377_v50 = vpop.f32.mrf.mxu2  ;;  %v397_v51 = vpop.f32.mrf.mxu3 }
  0xc0   : > { %430 = vst [vmem:[%s745_s7 + $0x90] sm:$0xff] %v377_v50  ;;  %v339_v52 = vpop.f32.mrf.mxu0  ;;  %v359_v53 = vpop.f32.mrf.mxu1 }
  0xc1   : > { %438 = vst [vmem:[%s745_s7 + $0xd0] sm:$0xff] %v397_v51 }
  0xc2   : > { %415 = vst [vmem:[%s745_s7 + $0x18] sm:$0xff] %v339_v52 }
  0xc3   : > { %423 = vst [vmem:[%s745_s7 + $0x58] sm:$0xff] %v359_v53 }
  0xc7   : > { %v379_v54 = vpop.f32.mrf.mxu2  ;;  %v399_v55 = vpop.f32.mrf.mxu3 }
  0xc8   : > { %431 = vst [vmem:[%s745_s7 + $0x98] sm:$0xff] %v379_v54  ;;  %v342_v56 = vpop.f32.mrf.mxu0  ;;  %v362_v57 = vpop.f32.mrf.mxu1 }
  0xc9   : > { %439 = vst [vmem:[%s745_s7 + $0xd8] sm:$0xff] %v399_v55 }
  0xca   : > { %416 = vst [vmem:[%s745_s7 + $0x20] sm:$0xff] %v342_v56 }
  0xcb   : > { %424 = vst [vmem:[%s745_s7 + $0x60] sm:$0xff] %v362_v57 }
  0xcf   : > { %v382_v58 = vpop.f32.mrf.mxu2  ;;  %v402_v59 = vpop.f32.mrf.mxu3 }
  0xd0   : > { %432 = vst [vmem:[%s745_s7 + $0xa0] sm:$0xff] %v382_v58  ;;  %v344_v60 = vpop.f32.mrf.mxu0  ;;  %v364_v61 = vpop.f32.mrf.mxu1 }
  0xd1   : > { %440 = vst [vmem:[%s745_s7 + $0xe0] sm:$0xff] %v402_v59 }
  0xd2   : > { %417 = vst [vmem:[%s745_s7 + $0x28] sm:$0xff] %v344_v60 }
  0xd3   : > { %425 = vst [vmem:[%s745_s7 + $0x68] sm:$0xff] %v364_v61 }
  0xd7   : > { %v384_v62 = vpop.f32.mrf.mxu2  ;;  %v404_v63 = vpop.f32.mrf.mxu3 }
  0xd8   : > { %433 = vst [vmem:[%s745_s7 + $0xa8] sm:$0xff] %v384_v62  ;;  %v347_v0 = vpop.f32.mrf.mxu0  ;;  %v367_v1 = vpop.f32.mrf.mxu1 }
  0xd9   : > { %441 = vst [vmem:[%s745_s7 + $0xe8] sm:$0xff] %v404_v63 }
  0xda   : > { %418 = vst [vmem:[%s745_s7 + $0x30] sm:$0xff] %v347_v0 }
  0xdb   : > { %426 = vst [vmem:[%s745_s7 + $0x70] sm:$0xff] %v367_v1 }
  0xdf   : > { %v387_v2 = vpop.f32.mrf.mxu2  ;;  %v407_v3 = vpop.f32.mrf.mxu3 }
  0xe0   : > { %434 = vst [vmem:[%s745_s7 + $0xb0] sm:$0xff] %v387_v2  ;;  %v349_v4 = vpop.f32.mrf.mxu0  ;;  %v369_v5 = vpop.f32.mrf.mxu1 }
  0xe1   : > { %442 = vst [vmem:[%s745_s7 + $0xf0] sm:$0xff] %v407_v3 }
  0xe2   : > { %419 = vst [vmem:[%s745_s7 + $0x38] sm:$0xff] %v349_v4 }
  0xe3   : > { %427 = vst [vmem:[%s745_s7 + $0x78] sm:$0xff] %v369_v5 }
  0xe7   : > { %v389_v6 = vpop.f32.mrf.mxu2  ;;  %v409_v7 = vpop.f32.mrf.mxu3 }
  0xe8   : > { %435 = vst [vmem:[%s745_s7 + $0xb8] sm:$0xff] %v389_v6 }
  0xe9   : > { %443 = vst [vmem:[%s745_s7 + $0xf8] sm:$0xff] %v409_v7 }
  0xea PF: > { %s12_s9 = sadd.s32 1, %s668_s9  }
  0xeb   : > { %p9_p4 = scmp.ge.s32.totalorder %s12_s9, 4  }
  0xed   :  { %11 = sbr.rel (!%p9_p4) target bundleno = 1 (0x1), region = 58 }

</bundles_post_ra>
